<compile_context>
chip_gen: v6e
topology: v6e:2x2x1
jax: 0.10.0
libtpu: 0.0.40
codegen_flags: <defaults>
</compile_context>

<pallas_src>
import math

import jax
import jax.numpy as jnp
from jax.experimental import pallas as pl
from jax.experimental.pallas import tpu as pltpu


def _round_up(x: int, m: int) -> int:
    return ((x + m - 1) // m) * m


def gcn_kernel(adj_ref, xs_ref, dinv_ref, w_ref, b_ref, o_ref, acc_ref):
    """Grid = (row tiles i, reduction tiles k). k is innermost/'arbitrary'.

    adj_ref : [tm, tk]      bf16   adjacency tile
    xs_ref  : [tk, F_in]    bf16   x pre-scaled by column dinv (K tile)
    dinv_ref: [tm, 1]       f32    row-side d^-0.5
    w_ref   : [F_in, F_outP]f32    resident linear weight (pre-transposed)
    b_ref   : [1, F_outP]   f32    resident bias
    o_ref   : [tm, F_outP]  f32    output tile (written at k == last)
    acc_ref : [tm, F_in]    f32    VMEM accumulator for adj @ x_scaled
    """
    k = pl.program_id(1)

    @pl.when(k == 0)
    def _init():
        acc_ref[...] = jnp.zeros_like(acc_ref)

    # Streamed N^2 matmul on the MXU, bf16 inputs, f32 accumulation.
    acc_ref[...] += jnp.dot(adj_ref[...], xs_ref[...],
                            preferred_element_type=jnp.float32)

    @pl.when(k == pl.num_programs(1) - 1)
    def _finalize():
        # Row-side normalization, then the nn.Linear (small, f32).
        h = dinv_ref[...] * acc_ref[...]                     # [tm, F_in]
        out = jnp.dot(h, w_ref[...],
                      preferred_element_type=jnp.float32)    # [tm, F_outP]
        o_ref[...] = (out + b_ref[...]).astype(o_ref.dtype)


def graph_conv_layer(adj, x, w, b, *, tm=256, tk=512):
    """adj: [N,N], x: [N,F_in], w: [F_in,F_out] (W.T), b: [1,F_out] -> [N,F_out]."""
    n, f_in = x.shape
    f_out = w.shape[1]

    adj = adj.astype(jnp.float32)
    x = x.astype(jnp.float32)

    # Degree / d^-0.5 hoisted out of the tiled kernel (matches torch.pow(d,-0.5)).
    deg = jnp.sum(adj, axis=1, keepdims=True)                # [N, 1]
    dinv = deg ** -0.5                                       # inf for isolated nodes (matches torch)

    # Fold the column-side scaling into x once; stream it in bf16.
    x_scaled = dinv * x                                      # [N, F_in], f32

    # Tile / padding bookkeeping: tiles must divide the padded N,
    # output last dim padded to a lane-dense multiple of 128.
    n_up = _round_up(n, 128)
    tm = min(tm, n_up)
    tk = min(tk, n_up)
    n_pad = _round_up(n, math.lcm(tm, tk))
    f_out_p = _round_up(f_out, 128)

    adj_p = jnp.pad(adj.astype(jnp.bfloat16), ((0, n_pad - n), (0, n_pad - n)))
    xs_p = jnp.pad(x_scaled.astype(jnp.bfloat16), ((0, n_pad - n), (0, 0)))
    dinv_p = jnp.pad(dinv, ((0, n_pad - n), (0, 0)))
    w_p = jnp.pad(w.astype(jnp.float32), ((0, 0), (0, f_out_p - f_out)))
    b_p = jnp.pad(b.reshape(1, f_out).astype(jnp.float32),
                  ((0, 0), (0, f_out_p - f_out)))

    grid = (n_pad // tm, n_pad // tk)

    cost = pl.CostEstimate(
        flops=int(2 * n_pad * n_pad * f_in + 2 * n_pad * f_in * f_out_p),
        transcendentals=0,
        bytes_accessed=int(2 * n_pad * n_pad + 2 * n_pad * f_in + 4 * n_pad
                           + 4 * f_in * f_out_p + 4 * f_out_p
                           + 4 * n_pad * f_out_p),
    )

    out_p = pl.pallas_call(
        gcn_kernel,
        out_shape=jax.ShapeDtypeStruct((n_pad, f_out_p), jnp.float32),
        grid_spec=pltpu.PrefetchScalarGridSpec(
            num_scalar_prefetch=0,
            grid=grid,
            in_specs=[
                pl.BlockSpec((tm, tk), lambda i, k: (i, k)),         # adj tile
                pl.BlockSpec((tk, f_in), lambda i, k: (k, 0)),       # x_scaled K tile
                pl.BlockSpec((tm, 1), lambda i, k: (i, 0)),          # row dinv
                pl.BlockSpec((f_in, f_out_p), lambda i, k: (0, 0)),  # W (resident)
                pl.BlockSpec((1, f_out_p), lambda i, k: (0, 0)),     # bias (resident)
            ],
            out_specs=pl.BlockSpec((tm, f_out_p), lambda i, k: (i, 0)),
            scratch_shapes=[pltpu.VMEM((tm, f_in), jnp.float32)],
        ),
        compiler_params=pltpu.CompilerParams(
            dimension_semantics=("parallel", "arbitrary"),
            vmem_limit_bytes=32 * 1024 * 1024,
        ),
        cost_estimate=cost,
    )(adj_p, xs_p, dinv_p, w_p, b_p)

    return out_p[:n, :f_out]


def reference(adj, x, w, b):
    deg = jnp.sum(adj, axis=1)
    dinv = deg ** -0.5
    norm = dinv[:, None] * adj * dinv[None, :]
    h = jnp.dot(norm, x, precision=jax.lax.Precision.HIGHEST)
    return jnp.dot(h, w, precision=jax.lax.Precision.HIGHEST) + b


if __name__ == "__main__":
    # Small-but-representative problem: exercises N padding (768 -> 1024),
    # multi-step K reduction, full-dim F_in block (64) and F_out padding (96 -> 128).
    N, F_IN, F_OUT = 768, 64, 96

    key = jax.random.PRNGKey(0)
    k_adj, k_x, k_w, k_b = jax.random.split(key, 4)

    # Symmetric 0/1 adjacency with self loops (positive degrees everywhere).
    a = (jax.random.uniform(k_adj, (N, N)) > 0.9).astype(jnp.float32)
    adj = jnp.clip(a + a.T + jnp.eye(N, dtype=jnp.float32), 0.0, 1.0)

    x = jax.random.normal(k_x, (N, F_IN), dtype=jnp.float32)

    # nn.Linear(F_IN, F_OUT): weight [F_OUT, F_IN], bias [F_OUT]; pre-transposed.
    bound = 1.0 / jnp.sqrt(jnp.float32(F_IN))
    w_linear = jax.random.uniform(k_w, (F_OUT, F_IN), jnp.float32, -bound, bound)
    b_linear = jax.random.uniform(k_b, (F_OUT,), jnp.float32, -bound, bound)
    w = w_linear.T                      # [F_IN, F_OUT]
    b = b_linear.reshape(1, F_OUT)      # [1, F_OUT]

    out = jax.jit(graph_conv_layer)(adj, x, w, b)
    out = jax.block_until_ready(out)

    ref = reference(adj, x, w, b)
    assert out.shape == (N, F_OUT)
    max_err = float(jnp.max(jnp.abs(out - ref)))
    # bf16 streaming of adj / pre-scaled x with f32 accumulation -> ~1e-3 rel err.
    assert jnp.allclose(out, ref, atol=2e-2, rtol=2e-2), (
        f"mismatch vs reference (max abs err {max_err})")

    print("KERNEL_OK")
</pallas_src>

<mosaic_0001>
module attributes {stable_mosaic.version = 11 : i64} {
  func.func @gcn_kernel(%arg0: i32, %arg1: i32, %arg2: memref<256x512xbf16, #tpu.memory_space<vmem>>, %arg3: memref<512x64xbf16, #tpu.memory_space<vmem>>, %arg4: memref<256x1xf32, #tpu.memory_space<vmem>>, %arg5: memref<64x128xf32, #tpu.memory_space<vmem>>, %arg6: memref<1x128xf32, #tpu.memory_space<vmem>>, %arg7: memref<256x128xf32, #tpu.memory_space<vmem>>, %arg8: memref<256x64xf32, #tpu.memory_space<vmem>>) attributes {dimension_semantics = [#tpu.dimension_semantics<parallel>, #tpu.dimension_semantics<arbitrary>], iteration_bounds = array<i64: 4, 2>, scalar_prefetch = 0 : i64, scratch_operands = 1 : i64, tpu.core_type = #tpu.core_type<tc>, window_params = [{transform_indices = @transform_0, window_bounds = array<i64: 256, 512>}, {transform_indices = @transform_1, window_bounds = array<i64: 512, 64>}, {transform_indices = @transform_2, window_bounds = array<i64: 256, 1>}, {pipeline_mode = #tpu.pipeline_mode<synchronous>, transform_indices = @transform_3, window_bounds = array<i64: 64, 128>}, {pipeline_mode = #tpu.pipeline_mode<synchronous>, transform_indices = @transform_4, window_bounds = array<i64: 1, 128>}, {transform_indices = @transform_5, window_bounds = array<i64: 256, 128>}]} {
    %c0_i32 = arith.constant 0 : i32
    %0 = arith.cmpi eq, %arg1, %c0_i32 : i32
    %1 = arith.extui %0 : i1 to i32
    %c0_i32_0 = arith.constant 0 : i32
    %2 = arith.cmpi ne, %1, %c0_i32_0 : i32
    scf.if %2 {
      %cst_9 = arith.constant 0.000000e+00 : f32
      %12 = vector.broadcast %cst_9 : f32 to vector<256x64xf32>
      %c0_10 = arith.constant 0 : index
      %c0_11 = arith.constant 0 : index
      %13 = vector.load %arg8[%c0_10, %c0_11] : memref<256x64xf32, #tpu.memory_space<vmem>>, vector<256x64xf32>
      tpu.vector_store %arg8[%c0_10, %c0_11], %12 {strides = array<i32>} : memref<256x64xf32, #tpu.memory_space<vmem>>, vector<256x64xf32>,
    } else {
    }
    %c0 = arith.constant 0 : index
    %c0_1 = arith.constant 0 : index
    %3 = vector.load %arg8[%c0, %c0_1] : memref<256x64xf32, #tpu.memory_space<vmem>>, vector<256x64xf32>
    %c0_2 = arith.constant 0 : index
    %c0_3 = arith.constant 0 : index
    %4 = vector.load %arg2[%c0_2, %c0_3] : memref<256x512xbf16, #tpu.memory_space<vmem>>, vector<256x512xbf16>
    %c0_4 = arith.constant 0 : index
    %c0_5 = arith.constant 0 : index
    %5 = vector.load %arg3[%c0_4, %c0_5] : memref<512x64xbf16, #tpu.memory_space<vmem>>, vector<512x64xbf16>
    %cst = arith.constant dense<0.000000e+00> : vector<256x64xf32>
    %6 = tpu.matmul %4, %5, %cst {dimension_numbers = #tpu.dot_dimension_numbers<[1], [0], [0], [1], [0, 0, 1, 1], [], []>} : vector<256x512xbf16>, vector<512x64xbf16>, vector<256x64xf32> -> vector<256x64xf32>
    %7 = arith.addf %3, %6 : vector<256x64xf32>
    %c0_6 = arith.constant 0 : index
    %c0_7 = arith.constant 0 : index
    %8 = vector.load %arg8[%c0_6, %c0_7] : memref<256x64xf32, #tpu.memory_space<vmem>>, vector<256x64xf32>
    tpu.vector_store %arg8[%c0_6, %c0_7], %7 {strides = array<i32>} : memref<256x64xf32, #tpu.memory_space<vmem>>, vector<256x64xf32>,
    %c1_i32 = arith.constant 1 : i32
    %9 = arith.cmpi eq, %arg1, %c1_i32 : i32
    %10 = arith.extui %9 : i1 to i32
    %c0_i32_8 = arith.constant 0 : i32
    %11 = arith.cmpi ne, %10, %c0_i32_8 : i32
    scf.if %11 {
      %c0_9 = arith.constant 0 : index
      %c0_10 = arith.constant 0 : index
      %12 = vector.load %arg4[%c0_9, %c0_10] : memref<256x1xf32, #tpu.memory_space<vmem>>, vector<256x1xf32>
      %c0_11 = arith.constant 0 : index
      %c0_12 = arith.constant 0 : index
      %13 = vector.load %arg8[%c0_11, %c0_12] : memref<256x64xf32, #tpu.memory_space<vmem>>, vector<256x64xf32>
      %14 = vector.broadcast %12 : vector<256x1xf32> to vector<256x64xf32>
      %15 = arith.mulf %14, %13 : vector<256x64xf32>
      %c0_13 = arith.constant 0 : index
      %c0_14 = arith.constant 0 : index
      %16 = vector.load %arg5[%c0_13, %c0_14] : memref<64x128xf32, #tpu.memory_space<vmem>>, vector<64x128xf32>
      %cst_15 = arith.constant dense<0.000000e+00> : vector<256x128xf32>
      %17 = tpu.matmul %15, %16, %cst_15 {dimension_numbers = #tpu.dot_dimension_numbers<[1], [0], [0], [1], [0, 0, 1, 1], [], []>} : vector<256x64xf32>, vector<64x128xf32>, vector<256x128xf32> -> vector<256x128xf32>
      %c0_16 = arith.constant 0 : index
      %c0_17 = arith.constant 0 : index
      %18 = vector.load %arg6[%c0_16, %c0_17] : memref<1x128xf32, #tpu.memory_space<vmem>>, vector<1x128xf32>
      %19 = vector.broadcast %18 : vector<1x128xf32> to vector<256x128xf32>
      %20 = arith.addf %17, %19 : vector<256x128xf32>
      %c0_18 = arith.constant 0 : index
      %c0_19 = arith.constant 0 : index
      %21 = vector.load %arg7[%c0_18, %c0_19] : memref<256x128xf32, #tpu.memory_space<vmem>>, vector<256x128xf32>
      tpu.vector_store %arg7[%c0_18, %c0_19], %20 {strides = array<i32>} : memref<256x128xf32, #tpu.memory_space<vmem>>, vector<256x128xf32>,
    } else {
    }
    return
  }
  func.func @transform_0(%arg0: i32, %arg1: i32) -> (i32, i32) {
    %c0_i32 = arith.constant 0 : i32
    return %arg0, %arg1 : i32, i32
  }
  func.func @transform_1(%arg0: i32, %arg1: i32) -> (i32, i32) {
    %c0_i32 = arith.constant 0 : i32
    %c0_i32_0 = arith.constant 0 : i32
    return %arg1, %c0_i32 : i32, i32
  }
  func.func @transform_2(%arg0: i32, %arg1: i32) -> (i32, i32) {
    %c0_i32 = arith.constant 0 : i32
    %c0_i32_0 = arith.constant 0 : i32
    return %arg0, %c0_i32 : i32, i32
  }
  func.func @transform_3(%arg0: i32, %arg1: i32) -> (i32, i32) {
    %c0_i32 = arith.constant 0 : i32
    %c0_i32_0 = arith.constant 0 : i32
    %c0_i32_1 = arith.constant 0 : i32
    return %c0_i32, %c0_i32_0 : i32, i32
  }
  func.func @transform_4(%arg0: i32, %arg1: i32) -> (i32, i32) {
    %c0_i32 = arith.constant 0 : i32
    %c0_i32_0 = arith.constant 0 : i32
    %c0_i32_1 = arith.constant 0 : i32
    return %c0_i32, %c0_i32_0 : i32, i32
  }
  func.func @transform_5(%arg0: i32, %arg1: i32) -> (i32, i32) {
    %c0_i32 = arith.constant 0 : i32
    %c0_i32_0 = arith.constant 0 : i32
    return %arg0, %c0_i32 : i32, i32
  }
}

</mosaic_0001>

<bundles_post_ra>
// kernel: graph_conv_layer.1
= control target key start
LH: loop header
LB: loop body
LE: loop exit
PB: predicated region body
PF: predicated region fallthrough
CT: control target
= control target key end

     0   :  { %s3032_s18 = smov 0   ;;  %s3034_s19 = smov 0   ;;  %s3586_s0 = inlined_call_operand.vmem [shape: bf16[1024,1024], index: 0, kind: input, shape index: {}]   ;;  %s3587_s1 = inlined_call_operand.vmem [shape: bf16[1024,64], index: 1, kind: input, shape index: {}]   ;;  %s3588_s2 = inlined_call_operand.vmem [shape: f32[1024,1], index: 2, kind: input, shape index: {}]   ;;  %s3589_s3 = inlined_call_operand.vmem [shape: f32[64,128], index: 3, kind: input, shape index: {}]   ;;  %s3590_s4 = inlined_call_operand.vmem [shape: f32[1,128], index: 4, kind: input, shape index: {}]   ;;  %s3591_s5 = inlined_call_operand.vmem [shape: f32[1024,128], index: 5, kind: output, shape index: {}]  }
   0x1   :  { %s3036_s20 = smov 0   ;;  %s3038_s21 = smov 0  }
   0x2   :  { %s3040_s22 = smov 0   ;;  %s3042_s23 = smov 0  }
   0x3   :  { %s3044_s24 = smov 0  }
   0x4 LB: > { %s24_s25 = sadd.s32 1, %s2990_s22  ;;  %s27_s26 = sadd.s32 1, %s2994_s23  ;;  %s2998_s24 = sphi %s3044_s24, %s15_s24   ;;  %s2994_s23 = sphi %s3042_s23, %s3597_s23   ;;  %s2990_s22 = sphi %s3040_s22, %s3596_s22   ;;  %s2986_s21 = sphi %s3038_s21, %s3595_s21   ;;  %s2982_s20 = sphi %s3036_s20, %s3594_s20   ;;  %s2978_s19 = sphi %s3034_s19, %s3593_s19   ;;  %s2974_s18 = sphi %s3032_s18, %s3592_s18  }
   0x5   : > { %p25_p0 = scmp.ge.s32.totalorder %s24_s25, 2  ;;  %p43_p1 = scmp.ne.s32.totalorder %s2978_s19, %s2974_s18 }
   0x6   : > { %p44_p2 = scmp.eq.s32.totalorder %s2998_s24, 0  ;;  %s36_s30 = sadd.s32 1, %s2978_s19 }
   0x7   : > { %s3599_s25 = smov (%p25_p0, %s24_s25), 0  ;;  %s3601_s26 = smov (!%p25_p0, %s27_s26), %s2994_s23 }
   0x8   : > { %p45_p3 = por %p44_p2, %p43_p1  ;;  %p29_p4 = scmp.ge.s32.totalorder %s3601_s26, 4 }
   0x9   : > { %s32_s27 = ssub.s32 %s2990_s22, %s3599_s25  ;;  %p2264_p6 = scmp.ge.s32.totalorder %s2998_s24, 8 }
   0xa   : > { %s3603_s26 = smov (%p29_p4, %s3601_s26), 0 }
   0xb   : > { %s31_s28 = ssub.s32 %s2994_s23, %s3603_s26  ;;  %195 = sbr.rel (%p2264_p6) target bundleno = 55 (0x37), region = 24 }
   0xc   : > { %s33_s29 = sor.u32 %s32_s27, %s31_s28 }
   0xd   : > { %p34_p5 = scmp.eq.s32.totalorder %s33_s29, 0 }
   0xf   : > { %s3083_s6 = scalar_select %p34_p5, %s2978_s19, %s36_s30  }
  0x10   : > { %198 = sbr.rel (!%p45_p3) target bundleno = 55 (0x37), region = 28  ;;  %s200_s7 = sand.u32 (%p45_p3), 1, %s2978_s19  }
  0x11   : > { %s2267_s8 = sshll.u32 (%p45_p3), %s2990_s22, 2  ;;  %s2265_s9 = sshll.u32 (%p45_p3), %s200_s7, 9 }
  0x12   : > { %s2411_s10 = sshll.u32 (%p45_p3), %s2994_s23, 8  ;;  %s3097_s16 = scalar_lea.vmem (%p45_p3), [#allocation3], %s2265_s9 }
  0x13   : > { %s206_s11 = sadd.s32 (%p45_p3), %s2411_s10, %s2267_s8 }
  0x14   : > { %s2269_s12 = sshll.u32 (%p45_p3), %s206_s11, 2 }
  0x15   : > { %s3092_s15 = scalar_lea.vmem %s3586_s0, %s2269_s12 }
  0x16   : > { %v221_v0 = vld [vmem:[%s3092_s15] sm:$0xff]  ;;  %v223_v1 = vld [vmem:[%s3092_s15 + $0x8] sm:$0xff] }
  0x17   : > { %v225_v2 = vld [vmem:[%s3092_s15 + $0x20] sm:$0xff]  ;;  %222 = vst [vmem:[%s3097_s16] sm:$0xff] %v221_v0  ;;  %224 = vst [vmem:[%s3097_s16 + $0x8] sm:$0xff] %v223_v1  ;;  %v227_v3 = vld [vmem:[%s3092_s15 + $0x28] sm:$0xff] }
  0x18   : > { %226 = vst [vmem:[%s3097_s16 + $0x10] sm:$0xff] %v225_v2  ;;  %v229_v4 = vld [vmem:[%s3092_s15 + $0x40] sm:$0xff]  ;;  %v231_v5 = vld [vmem:[%s3092_s15 + $0x48] sm:$0xff]  ;;  %228 = vst [vmem:[%s3097_s16 + $0x18] sm:$0xff] %v227_v3 }
  0x19   : > { %230 = vst [vmem:[%s3097_s16 + $0x20] sm:$0xff] %v229_v4  ;;  %232 = vst [vmem:[%s3097_s16 + $0x28] sm:$0xff] %v231_v5  ;;  %v233_v6 = vld [vmem:[%s3092_s15 + $0x60] sm:$0xff]  ;;  %v235_v7 = vld [vmem:[%s3092_s15 + $0x68] sm:$0xff] }
  0x1a   : > { %v237_v8 = vld [vmem:[%s3092_s15 + $0x80] sm:$0xff]  ;;  %234 = vst [vmem:[%s3097_s16 + $0x30] sm:$0xff] %v233_v6  ;;  %236 = vst [vmem:[%s3097_s16 + $0x38] sm:$0xff] %v235_v7  ;;  %v239_v9 = vld [vmem:[%s3092_s15 + $0x88] sm:$0xff] }
  0x1b   : > { %238 = vst [vmem:[%s3097_s16 + $0x40] sm:$0xff] %v237_v8  ;;  %v241_v10 = vld [vmem:[%s3092_s15 + $0xa0] sm:$0xff]  ;;  %v243_v11 = vld [vmem:[%s3092_s15 + $0xa8] sm:$0xff]  ;;  %240 = vst [vmem:[%s3097_s16 + $0x48] sm:$0xff] %v239_v9 }
  0x1c   : > { %242 = vst [vmem:[%s3097_s16 + $0x50] sm:$0xff] %v241_v10  ;;  %244 = vst [vmem:[%s3097_s16 + $0x58] sm:$0xff] %v243_v11  ;;  %v245_v12 = vld [vmem:[%s3092_s15 + $0xc0] sm:$0xff]  ;;  %v247_v13 = vld [vmem:[%s3092_s15 + $0xc8] sm:$0xff] }
  0x1d   : > { %v249_v14 = vld [vmem:[%s3092_s15 + $0xe0] sm:$0xff]  ;;  %246 = vst [vmem:[%s3097_s16 + $0x60] sm:$0xff] %v245_v12  ;;  %248 = vst [vmem:[%s3097_s16 + $0x68] sm:$0xff] %v247_v13  ;;  %v251_v15 = vld [vmem:[%s3092_s15 + $0xe8] sm:$0xff] }
  0x1e   : > { %250 = vst [vmem:[%s3097_s16 + $0x70] sm:$0xff] %v249_v14  ;;  %v253_v16 = vld [vmem:[%s3092_s15 + $0x100] sm:$0xff]  ;;  %v255_v17 = vld [vmem:[%s3092_s15 + $0x108] sm:$0xff]  ;;  %252 = vst [vmem:[%s3097_s16 + $0x78] sm:$0xff] %v251_v15 }
  0x1f   : > { %254 = vst [vmem:[%s3097_s16 + $0x80] sm:$0xff] %v253_v16  ;;  %256 = vst [vmem:[%s3097_s16 + $0x88] sm:$0xff] %v255_v17  ;;  %v257_v18 = vld [vmem:[%s3092_s15 + $0x120] sm:$0xff]  ;;  %v259_v19 = vld [vmem:[%s3092_s15 + $0x128] sm:$0xff] }
  0x20   : > { %v261_v20 = vld [vmem:[%s3092_s15 + $0x140] sm:$0xff]  ;;  %258 = vst [vmem:[%s3097_s16 + $0x90] sm:$0xff] %v257_v18  ;;  %260 = vst [vmem:[%s3097_s16 + $0x98] sm:$0xff] %v259_v19  ;;  %v263_v21 = vld [vmem:[%s3092_s15 + $0x148] sm:$0xff] }
  0x21   : > { %262 = vst [vmem:[%s3097_s16 + $0xa0] sm:$0xff] %v261_v20  ;;  %v265_v22 = vld [vmem:[%s3092_s15 + $0x160] sm:$0xff]  ;;  %v267_v23 = vld [vmem:[%s3092_s15 + $0x168] sm:$0xff]  ;;  %264 = vst [vmem:[%s3097_s16 + $0xa8] sm:$0xff] %v263_v21 }
  0x22   : > { %266 = vst [vmem:[%s3097_s16 + $0xb0] sm:$0xff] %v265_v22  ;;  %268 = vst [vmem:[%s3097_s16 + $0xb8] sm:$0xff] %v267_v23  ;;  %v269_v24 = vld [vmem:[%s3092_s15 + $0x180] sm:$0xff]  ;;  %v271_v25 = vld [vmem:[%s3092_s15 + $0x188] sm:$0xff] }
  0x23   : > { %v273_v26 = vld [vmem:[%s3092_s15 + $0x1a0] sm:$0xff]  ;;  %270 = vst [vmem:[%s3097_s16 + $0xc0] sm:$0xff] %v269_v24  ;;  %272 = vst [vmem:[%s3097_s16 + $0xc8] sm:$0xff] %v271_v25  ;;  %v275_v27 = vld [vmem:[%s3092_s15 + $0x1a8] sm:$0xff] }
  0x24   : > { %274 = vst [vmem:[%s3097_s16 + $0xd0] sm:$0xff] %v273_v26  ;;  %v277_v28 = vld [vmem:[%s3092_s15 + $0x1c0] sm:$0xff]  ;;  %v279_v29 = vld [vmem:[%s3092_s15 + $0x1c8] sm:$0xff]  ;;  %276 = vst [vmem:[%s3097_s16 + $0xd8] sm:$0xff] %v275_v27 }
  0x25   : > { %278 = vst [vmem:[%s3097_s16 + $0xe0] sm:$0xff] %v277_v28  ;;  %280 = vst [vmem:[%s3097_s16 + $0xe8] sm:$0xff] %v279_v29  ;;  %v281_v30 = vld [vmem:[%s3092_s15 + $0x1e0] sm:$0xff]  ;;  %v283_v31 = vld [vmem:[%s3092_s15 + $0x1e8] sm:$0xff] }
  0x26   : > { %v285_v32 = vld [vmem:[%s3092_s15 + $0x200] sm:$0xff]  ;;  %282 = vst [vmem:[%s3097_s16 + $0xf0] sm:$0xff] %v281_v30  ;;  %284 = vst [vmem:[%s3097_s16 + $0xf8] sm:$0xff] %v283_v31  ;;  %v287_v33 = vld [vmem:[%s3092_s15 + $0x208] sm:$0xff] }
  0x27   : > { %286 = vst [vmem:[%s3097_s16 + $0x100] sm:$0xff] %v285_v32  ;;  %v289_v34 = vld [vmem:[%s3092_s15 + $0x220] sm:$0xff]  ;;  %v291_v35 = vld [vmem:[%s3092_s15 + $0x228] sm:$0xff]  ;;  %288 = vst [vmem:[%s3097_s16 + $0x108] sm:$0xff] %v287_v33 }
  0x28   : > { %290 = vst [vmem:[%s3097_s16 + $0x110] sm:$0xff] %v289_v34  ;;  %292 = vst [vmem:[%s3097_s16 + $0x118] sm:$0xff] %v291_v35  ;;  %v293_v36 = vld [vmem:[%s3092_s15 + $0x240] sm:$0xff]  ;;  %v295_v37 = vld [vmem:[%s3092_s15 + $0x248] sm:$0xff] }
  0x29   : > { %v297_v38 = vld [vmem:[%s3092_s15 + $0x260] sm:$0xff]  ;;  %294 = vst [vmem:[%s3097_s16 + $0x120] sm:$0xff] %v293_v36  ;;  %296 = vst [vmem:[%s3097_s16 + $0x128] sm:$0xff] %v295_v37  ;;  %v299_v39 = vld [vmem:[%s3092_s15 + $0x268] sm:$0xff] }
  0x2a   : > { %298 = vst [vmem:[%s3097_s16 + $0x130] sm:$0xff] %v297_v38  ;;  %v301_v40 = vld [vmem:[%s3092_s15 + $0x280] sm:$0xff]  ;;  %v303_v41 = vld [vmem:[%s3092_s15 + $0x288] sm:$0xff]  ;;  %300 = vst [vmem:[%s3097_s16 + $0x138] sm:$0xff] %v299_v39 }
  0x2b   : > { %302 = vst [vmem:[%s3097_s16 + $0x140] sm:$0xff] %v301_v40  ;;  %304 = vst [vmem:[%s3097_s16 + $0x148] sm:$0xff] %v303_v41  ;;  %v305_v42 = vld [vmem:[%s3092_s15 + $0x2a0] sm:$0xff]  ;;  %v307_v43 = vld [vmem:[%s3092_s15 + $0x2a8] sm:$0xff] }
  0x2c   : > { %v309_v44 = vld [vmem:[%s3092_s15 + $0x2c0] sm:$0xff]  ;;  %306 = vst [vmem:[%s3097_s16 + $0x150] sm:$0xff] %v305_v42  ;;  %308 = vst [vmem:[%s3097_s16 + $0x158] sm:$0xff] %v307_v43  ;;  %v311_v45 = vld [vmem:[%s3092_s15 + $0x2c8] sm:$0xff] }
  0x2d   : > { %310 = vst [vmem:[%s3097_s16 + $0x160] sm:$0xff] %v309_v44  ;;  %v313_v46 = vld [vmem:[%s3092_s15 + $0x2e0] sm:$0xff]  ;;  %v315_v47 = vld [vmem:[%s3092_s15 + $0x2e8] sm:$0xff]  ;;  %312 = vst [vmem:[%s3097_s16 + $0x168] sm:$0xff] %v311_v45 }
  0x2e   : > { %314 = vst [vmem:[%s3097_s16 + $0x170] sm:$0xff] %v313_v46  ;;  %316 = vst [vmem:[%s3097_s16 + $0x178] sm:$0xff] %v315_v47  ;;  %v317_v48 = vld [vmem:[%s3092_s15 + $0x300] sm:$0xff]  ;;  %v319_v49 = vld [vmem:[%s3092_s15 + $0x308] sm:$0xff] }
  0x2f   : > { %v321_v50 = vld [vmem:[%s3092_s15 + $0x320] sm:$0xff]  ;;  %318 = vst [vmem:[%s3097_s16 + $0x180] sm:$0xff] %v317_v48  ;;  %320 = vst [vmem:[%s3097_s16 + $0x188] sm:$0xff] %v319_v49  ;;  %v323_v51 = vld [vmem:[%s3092_s15 + $0x328] sm:$0xff] }
  0x30   : > { %322 = vst [vmem:[%s3097_s16 + $0x190] sm:$0xff] %v321_v50  ;;  %v325_v52 = vld [vmem:[%s3092_s15 + $0x340] sm:$0xff]  ;;  %v327_v53 = vld [vmem:[%s3092_s15 + $0x348] sm:$0xff]  ;;  %324 = vst [vmem:[%s3097_s16 + $0x198] sm:$0xff] %v323_v51 }
  0x31   : > { %326 = vst [vmem:[%s3097_s16 + $0x1a0] sm:$0xff] %v325_v52  ;;  %328 = vst [vmem:[%s3097_s16 + $0x1a8] sm:$0xff] %v327_v53  ;;  %v329_v54 = vld [vmem:[%s3092_s15 + $0x360] sm:$0xff]  ;;  %v331_v55 = vld [vmem:[%s3092_s15 + $0x368] sm:$0xff] }
  0x32   : > { %v333_v56 = vld [vmem:[%s3092_s15 + $0x380] sm:$0xff]  ;;  %330 = vst [vmem:[%s3097_s16 + $0x1b0] sm:$0xff] %v329_v54  ;;  %332 = vst [vmem:[%s3097_s16 + $0x1b8] sm:$0xff] %v331_v55  ;;  %v335_v57 = vld [vmem:[%s3092_s15 + $0x388] sm:$0xff] }
  0x33   : > { %334 = vst [vmem:[%s3097_s16 + $0x1c0] sm:$0xff] %v333_v56  ;;  %v337_v58 = vld [vmem:[%s3092_s15 + $0x3a0] sm:$0xff]  ;;  %v339_v59 = vld [vmem:[%s3092_s15 + $0x3a8] sm:$0xff]  ;;  %336 = vst [vmem:[%s3097_s16 + $0x1c8] sm:$0xff] %v335_v57 }
  0x34   : > { %338 = vst [vmem:[%s3097_s16 + $0x1d0] sm:$0xff] %v337_v58  ;;  %340 = vst [vmem:[%s3097_s16 + $0x1d8] sm:$0xff] %v339_v59  ;;  %v341_v60 = vld [vmem:[%s3092_s15 + $0x3c0] sm:$0xff]  ;;  %v343_v61 = vld [vmem:[%s3092_s15 + $0x3c8] sm:$0xff] }
  0x35   : > { %v345_v62 = vld [vmem:[%s3092_s15 + $0x3e0] sm:$0xff]  ;;  %342 = vst [vmem:[%s3097_s16 + $0x1e0] sm:$0xff] %v341_v60  ;;  %344 = vst [vmem:[%s3097_s16 + $0x1e8] sm:$0xff] %v343_v61  ;;  %v347_v63 = vld [vmem:[%s3092_s15 + $0x3e8] sm:$0xff] }
  0x36   : > { %346 = vst [vmem:[%s3097_s16 + $0x1f0] sm:$0xff] %v345_v62  ;;  %348 = vst [vmem:[%s3097_s16 + $0x1f8] sm:$0xff] %v347_v63 }
  0x37 PF: > { %p2270_p7 = scmp.ge.s32.totalorder %s2998_s24, 1  ;;  %p371_p8 = scmp.lt.s32.totalorder %s2998_s24, 9 }
  0x39   : > { %p372_p9 = pnand %p2270_p7, %p371_p8 }
  0x3a   : > { %s378_s17 = sand.u32 (!%p372_p9), 1, %s2974_s18   ;;  %s2272_s27 = sshll.u32 (!%p372_p9), %s2982_s20, 6 }
  0x3b   : > { %375 = sbr.rel (%p372_p9) target bundleno = 836 (0x344), region = 59  ;;  %s2271_s28 = sshll.u32 (!%p372_p9), %s378_s17, 9 }
  0x3c   : > { %p418_p10 = scmp.lt.s32.totalorder (!%p372_p9), %s2272_s27, 127  ;;  %s2274_s29 = sshll.u32 (!%p372_p9), %s2986_s21, 5 }
  0x3d   : > { %p424_p11 = scmp.lt.s32.totalorder (!%p372_p9), %s2274_s29, 127  ;;  %s3244_s21 = scalar_lea.vmem (!%p372_p9), [#allocation3], %s2271_s28 }
  0x3e   : > { %p2278_p12 = scmp.ne.s32.totalorder (!%p372_p9), %s2982_s20, 0 }
  0x40   : > { %s3605_s27 = smov (!%p418_p10, %s2272_s27), 127  ;;  %s3607_s29 = smov (!%p424_p11, %s2274_s29), 127 }
  0x41   : > { %s2273_s30 = sshll.u32 %s3605_s27, 2  ;;  %s2275_s10 = sshll.u32 %s3607_s29, 3 }
  0x42   : > { %s3232_s9 = scalar_lea.vmem %s3587_s1, %s2273_s30  ;;  %s3237_s13 = scalar_lea.vmem %s3588_s2, %s2275_s10 }
  0x43   : > { %s3242_s15 = scalar_lea.vmem %s3591_s5, %s2275_s10  ;;  %439 = sbr.rel (%p2278_p12) target bundleno = 89 (0x59), region = 67 }
  0x48   : > { %vm440_vm0 = vcmask 523264   ;;  %v3000_v0 = vmov 0.0  }
  0x49   : > { %441 = vst.msk [vmem:[#allocation2] sm:$0xff] %vm440_vm0, %v3000_v0  ;;  %442 = vst.msk [vmem:[#allocation2 + $0x8] sm:$0xff] %vm440_vm0, %v3000_v0 }
  0x4a   : > { %443 = vst.msk [vmem:[#allocation2 + $0x10] sm:$0xff] %vm440_vm0, %v3000_v0  ;;  %444 = vst.msk [vmem:[#allocation2 + $0x18] sm:$0xff] %vm440_vm0, %v3000_v0 }
  0x4b   : > { %445 = vst.msk [vmem:[#allocation2 + $0x20] sm:$0xff] %vm440_vm0, %v3000_v0  ;;  %446 = vst.msk [vmem:[#allocation2 + $0x28] sm:$0xff] %vm440_vm0, %v3000_v0 }
  0x4c   : > { %447 = vst.msk [vmem:[#allocation2 + $0x30] sm:$0xff] %vm440_vm0, %v3000_v0  ;;  %448 = vst.msk [vmem:[#allocation2 + $0x38] sm:$0xff] %vm440_vm0, %v3000_v0 }
  0x4d   : > { %449 = vst.msk [vmem:[#allocation2 + $0x40] sm:$0xff] %vm440_vm0, %v3000_v0  ;;  %450 = vst.msk [vmem:[#allocation2 + $0x48] sm:$0xff] %vm440_vm0, %v3000_v0 }
  0x4e   : > { %451 = vst.msk [vmem:[#allocation2 + $0x50] sm:$0xff] %vm440_vm0, %v3000_v0  ;;  %452 = vst.msk [vmem:[#allocation2 + $0x58] sm:$0xff] %vm440_vm0, %v3000_v0 }
  0x4f   : > { %453 = vst.msk [vmem:[#allocation2 + $0x60] sm:$0xff] %vm440_vm0, %v3000_v0  ;;  %454 = vst.msk [vmem:[#allocation2 + $0x68] sm:$0xff] %vm440_vm0, %v3000_v0 }
  0x50   : > { %455 = vst.msk [vmem:[#allocation2 + $0x70] sm:$0xff] %vm440_vm0, %v3000_v0  ;;  %456 = vst.msk [vmem:[#allocation2 + $0x78] sm:$0xff] %vm440_vm0, %v3000_v0 }
  0x51   : > { %457 = vst.msk [vmem:[#allocation2 + $0x80] sm:$0xff] %vm440_vm0, %v3000_v0  ;;  %458 = vst.msk [vmem:[#allocation2 + $0x88] sm:$0xff] %vm440_vm0, %v3000_v0 }
  0x52   : > { %459 = vst.msk [vmem:[#allocation2 + $0x90] sm:$0xff] %vm440_vm0, %v3000_v0  ;;  %460 = vst.msk [vmem:[#allocation2 + $0x98] sm:$0xff] %vm440_vm0, %v3000_v0 }
  0x53   : > { %461 = vst.msk [vmem:[#allocation2 + $0xa0] sm:$0xff] %vm440_vm0, %v3000_v0  ;;  %462 = vst.msk [vmem:[#allocation2 + $0xa8] sm:$0xff] %vm440_vm0, %v3000_v0 }
  0x54   : > { %463 = vst.msk [vmem:[#allocation2 + $0xb0] sm:$0xff] %vm440_vm0, %v3000_v0  ;;  %464 = vst.msk [vmem:[#allocation2 + $0xb8] sm:$0xff] %vm440_vm0, %v3000_v0 }
  0x55   : > { %465 = vst.msk [vmem:[#allocation2 + $0xc0] sm:$0xff] %vm440_vm0, %v3000_v0  ;;  %466 = vst.msk [vmem:[#allocation2 + $0xc8] sm:$0xff] %vm440_vm0, %v3000_v0 }
  0x56   : > { %467 = vst.msk [vmem:[#allocation2 + $0xd0] sm:$0xff] %vm440_vm0, %v3000_v0  ;;  %468 = vst.msk [vmem:[#allocation2 + $0xd8] sm:$0xff] %vm440_vm0, %v3000_v0 }
  0x57   : > { %469 = vst.msk [vmem:[#allocation2 + $0xe0] sm:$0xff] %vm440_vm0, %v3000_v0  ;;  %470 = vst.msk [vmem:[#allocation2 + $0xe8] sm:$0xff] %vm440_vm0, %v3000_v0 }
  0x58   : > { %471 = vst.msk [vmem:[#allocation2 + $0xf0] sm:$0xff] %vm440_vm0, %v3000_v0  ;;  %472 = vst.msk [vmem:[#allocation2 + $0xf8] sm:$0xff] %vm440_vm0, %v3000_v0 }
  0x59 PF: > { %v2814_v1 = vld [vmem:[%s3232_s9 + $0x78] sm:$0xff]   ;;  %v2818_v5 = vld [vmem:[%s3232_s9 + $0x70] sm:$0xff]   ;;  %v2822_v9 = vld [vmem:[%s3232_s9 + $0x68] sm:$0xff]   ;;  %vm1499_vm1 = vcmask 523264   ;;  %p2375_p13 = scmp.ne.s32.totalorder %s2982_s20, 1 }
  0x5a   : > { %v2815_v2 = vld [vmem:[%s3232_s9 + $0xf8] sm:$0xff]   ;;  %2412 = vmatprep.subr.bf16.mxu0 %v2814_v1  ;;  %v2819_v6 = vld [vmem:[%s3232_s9 + $0xf0] sm:$0xff]   ;;  %v2823_v10 = vld [vmem:[%s3232_s9 + $0xe8] sm:$0xff]  }
  0x5b   : > { %v2816_v3 = vld [vmem:[%s3232_s9 + $0x38] sm:$0xff]   ;;  %2524 = vmatprep.subr.bf16.mxu1 %v2815_v2  ;;  %v2820_v7 = vld [vmem:[%s3232_s9 + $0x30] sm:$0xff]   ;;  %v2824_v11 = vld [vmem:[%s3232_s9 + $0x28] sm:$0xff]  }
  0x5c   : > { %v2817_v4 = vld [vmem:[%s3232_s9 + $0xb8] sm:$0xff]   ;;  %2413 = vmatpush3.bf16.msra.mxu0 %v2816_v3  ;;  %v2821_v8 = vld [vmem:[%s3232_s9 + $0xb0] sm:$0xff]   ;;  %v2825_v12 = vld [vmem:[%s3232_s9 + $0xa8] sm:$0xff]  }
  0x5d   : > { %2525 = vmatpush3.bf16.msra.mxu1 %v2817_v4  ;;  %2414 = vmatprep.subr.bf16.mxu0 %v2818_v5  ;;  %v2826_v13 = vld [vmem:[%s3232_s9 + $0x60] sm:$0xff]   ;;  %v2830_v17 = vld [vmem:[%s3232_s9 + $0x58] sm:$0xff]   ;;  %v2834_v21 = vld [vmem:[%s3232_s9 + $0x50] sm:$0xff]  }
  0x5e   : > { %2526 = vmatprep.subr.bf16.mxu1 %v2819_v6  ;;  %v2827_v14 = vld [vmem:[%s3232_s9 + $0xe0] sm:$0xff]   ;;  %v2831_v18 = vld [vmem:[%s3232_s9 + $0xd8] sm:$0xff]   ;;  %v2835_v22 = vld [vmem:[%s3232_s9 + $0xd0] sm:$0xff]  }
  0x5f   : > { %v2828_v15 = vld [vmem:[%s3232_s9 + $0x20] sm:$0xff]   ;;  %v2832_v19 = vld [vmem:[%s3232_s9 + $0x18] sm:$0xff]   ;;  %v2836_v23 = vld [vmem:[%s3232_s9 + $0x10] sm:$0xff]  }
  0x60   : > { %2415 = vmatpush3.bf16.msra.mxu0 %v2820_v7  ;;  %v2829_v16 = vld [vmem:[%s3232_s9 + $0xa0] sm:$0xff]   ;;  %v2833_v20 = vld [vmem:[%s3232_s9 + $0x98] sm:$0xff]   ;;  %v2837_v24 = vld [vmem:[%s3232_s9 + $0x90] sm:$0xff]  }
  0x61   : > { %2527 = vmatpush3.bf16.msra.mxu1 %v2821_v8  ;;  %2416 = vmatprep.subr.bf16.mxu0 %v2822_v9  ;;  %v2838_v25 = vld [vmem:[%s3232_s9 + $0x48] sm:$0xff]   ;;  %v2842_v29 = vld [vmem:[%s3232_s9 + $0x40] sm:$0xff]  }
  0x62   : > { %2528 = vmatprep.subr.bf16.mxu1 %v2823_v10  ;;  %v2839_v26 = vld [vmem:[%s3232_s9 + $0xc8] sm:$0xff]   ;;  %v2843_v30 = vld [vmem:[%s3232_s9 + $0xc0] sm:$0xff]  }
  0x63   : > { %v2840_v27 = vld [vmem:[%s3232_s9 + $0x8] sm:$0xff]   ;;  %v2844_v31 = vld [vmem:[%s3232_s9] sm:$0xff]  }
  0x64   : > { %2417 = vmatpush3.bf16.msra.mxu0 %v2824_v11  ;;  %v2841_v28 = vld [vmem:[%s3232_s9 + $0x88] sm:$0xff]   ;;  %v2845_v32 = vld [vmem:[%s3232_s9 + $0x80] sm:$0xff]  }
  0x65   : > { %2529 = vmatpush3.bf16.msra.mxu1 %v2825_v12  ;;  %2418 = vmatprep.subr.bf16.mxu0 %v2826_v13  ;;  %v2846_v33 = vld [vmem:[%s3244_s21] ss:$16 sps:$4 sm:$0xff]   ;;  %v2848_v34 = vld [vmem:[%s3244_s21 + $0x4] ss:$16 sps:$4 sm:$0xff]   ;;  %v2849_v35 = vld [vmem:[%s3244_s21 + $0x8] ss:$16 sps:$4 sm:$0xff]  }
  0x66   : > { %2530 = vmatprep.subr.bf16.mxu1 %v2827_v14  ;;  %v2851_v36 = vld [vmem:[%s3244_s21 + $0xc] ss:$16 sps:$4 sm:$0xff]   ;;  %1177 = vmatprep.mubr.bf16.mxu0 %v2848_v34  ;;  %v2852_v37 = vld [vmem:[%s3244_s21 + $0x24] ss:$16 sps:$4 sm:$0xff]   ;;  %v2856_v39 = vld [vmem:[%s3244_s21 + $0x20] ss:$16 sps:$4 sm:$0xff]  }
  0x67   : > { %1338 = vmatprep.mubr.bf16.mxu1 %v2851_v36  ;;  %v2854_v38 = vld [vmem:[%s3244_s21 + $0x2c] ss:$16 sps:$4 sm:$0xff]   ;;  %v2857_v40 = vld [vmem:[%s3244_s21 + $0x28] ss:$16 sps:$4 sm:$0xff]   ;;  %v2858_v41 = vld [vmem:[%s3244_s21 + $0x44] ss:$16 sps:$4 sm:$0xff]  }
  0x68   : > { %2419 = vmatpush3.bf16.msra.mxu0 %v2828_v15  ;;  %v2860_v42 = vld [vmem:[%s3244_s21 + $0x4c] ss:$16 sps:$4 sm:$0xff]   ;;  %v2862_v43 = vld [vmem:[%s3244_s21 + $0x40] ss:$16 sps:$4 sm:$0xff]   ;;  %v2863_v44 = vld [vmem:[%s3244_s21 + $0x48] ss:$16 sps:$4 sm:$0xff]  }
  0x69   : > { %2531 = vmatpush3.bf16.msra.mxu1 %v2829_v16  ;;  %2420 = vmatprep.subr.bf16.mxu0 %v2830_v17  ;;  %v2864_v45 = vld [vmem:[%s3244_s21 + $0x64] ss:$16 sps:$4 sm:$0xff]   ;;  %v2866_v46 = vld [vmem:[%s3244_s21 + $0x6c] ss:$16 sps:$4 sm:$0xff]   ;;  %v2868_v47 = vld [vmem:[%s3244_s21 + $0x60] ss:$16 sps:$4 sm:$0xff]  }
  0x6a   : > { %2532 = vmatprep.subr.bf16.mxu1 %v2831_v18  ;;  %v2869_v48 = vld [vmem:[%s3244_s21 + $0x68] ss:$16 sps:$4 sm:$0xff]   ;;  %v2870_v49 = vld [vmem:[%s3244_s21 + $0x84] ss:$16 sps:$4 sm:$0xff]   ;;  %v2872_v50 = vld [vmem:[%s3244_s21 + $0x8c] ss:$16 sps:$4 sm:$0xff]  }
  0x6b   : > { %v2874_v51 = vld [vmem:[%s3244_s21 + $0x80] ss:$16 sps:$4 sm:$0xff]   ;;  %v2875_v52 = vld [vmem:[%s3244_s21 + $0x88] ss:$16 sps:$4 sm:$0xff]   ;;  %v2876_v53 = vld [vmem:[%s3244_s21 + $0xa4] ss:$16 sps:$4 sm:$0xff]  }
  0x6c   : > { %2421 = vmatpush3.bf16.msra.mxu0 %v2832_v19  ;;  %v2878_v54 = vld [vmem:[%s3244_s21 + $0xac] ss:$16 sps:$4 sm:$0xff]   ;;  %v2880_v55 = vld [vmem:[%s3244_s21 + $0xa0] ss:$16 sps:$4 sm:$0xff]   ;;  %v2881_v56 = vld [vmem:[%s3244_s21 + $0xa8] ss:$16 sps:$4 sm:$0xff]  }
  0x6d   : > { %2533 = vmatpush3.bf16.msra.mxu1 %v2833_v20  ;;  %2422 = vmatprep.subr.bf16.mxu0 %v2834_v21  ;;  %v2882_v57 = vld [vmem:[%s3244_s21 + $0xc4] ss:$16 sps:$4 sm:$0xff]   ;;  %v2884_v58 = vld [vmem:[%s3244_s21 + $0xcc] ss:$16 sps:$4 sm:$0xff]   ;;  %v2886_v59 = vld [vmem:[%s3244_s21 + $0xc0] ss:$16 sps:$4 sm:$0xff]  }
  0x6e   : > { %2534 = vmatprep.subr.bf16.mxu1 %v2835_v22  ;;  %v2887_v60 = vld [vmem:[%s3244_s21 + $0xc8] ss:$16 sps:$4 sm:$0xff]   ;;  %v2888_v61 = vld [vmem:[%s3244_s21 + $0xe4] ss:$16 sps:$4 sm:$0xff]   ;;  %v2890_v62 = vld [vmem:[%s3244_s21 + $0xec] ss:$16 sps:$4 sm:$0xff]  }
  0x6f   : > { %v2892_v63 = vld [vmem:[%s3244_s21 + $0xe0] ss:$16 sps:$4 sm:$0xff]   ;;  %v2893_v0 = vld [vmem:[%s3244_s21 + $0xe8] ss:$16 sps:$4 sm:$0xff]   ;;  %v2894_v1 = vld [vmem:[%s3244_s21 + $0x104] ss:$16 sps:$4 sm:$0xff]  }
  0x70   : > { %2423 = vmatpush3.bf16.msra.mxu0 %v2836_v23  ;;  %v2896_v2 = vld [vmem:[%s3244_s21 + $0x10c] ss:$16 sps:$4 sm:$0xff]   ;;  %v2898_v3 = vld [vmem:[%s3244_s21 + $0x100] ss:$16 sps:$4 sm:$0xff]   ;;  %v2899_v4 = vld [vmem:[%s3244_s21 + $0x108] ss:$16 sps:$4 sm:$0xff]  }
  0x71   : > { %2535 = vmatpush3.bf16.msra.mxu1 %v2837_v24  ;;  %2424 = vmatprep.subr.bf16.mxu0 %v2838_v25  ;;  %v2900_v5 = vld [vmem:[%s3244_s21 + $0x124] ss:$16 sps:$4 sm:$0xff]   ;;  %v2902_v6 = vld [vmem:[%s3244_s21 + $0x12c] ss:$16 sps:$4 sm:$0xff]   ;;  %v2904_v7 = vld [vmem:[%s3244_s21 + $0x120] ss:$16 sps:$4 sm:$0xff]  }
  0x72   : > { %2536 = vmatprep.subr.bf16.mxu1 %v2839_v26  ;;  %v2905_v8 = vld [vmem:[%s3244_s21 + $0x128] ss:$16 sps:$4 sm:$0xff]   ;;  %v2906_v9 = vld [vmem:[%s3244_s21 + $0x144] ss:$16 sps:$4 sm:$0xff]   ;;  %v2908_v10 = vld [vmem:[%s3244_s21 + $0x14c] ss:$16 sps:$4 sm:$0xff]  }
  0x73   : > { %v2910_v11 = vld [vmem:[%s3244_s21 + $0x140] ss:$16 sps:$4 sm:$0xff]   ;;  %v2911_v12 = vld [vmem:[%s3244_s21 + $0x148] ss:$16 sps:$4 sm:$0xff]   ;;  %v2912_v13 = vld [vmem:[%s3244_s21 + $0x164] ss:$16 sps:$4 sm:$0xff]  }
  0x74   : > { %2425 = vmatpush3.bf16.msra.mxu0 %v2840_v27  ;;  %v2914_v14 = vld [vmem:[%s3244_s21 + $0x16c] ss:$16 sps:$4 sm:$0xff]   ;;  %v2916_v15 = vld [vmem:[%s3244_s21 + $0x160] ss:$16 sps:$4 sm:$0xff]   ;;  %v2917_v16 = vld [vmem:[%s3244_s21 + $0x168] ss:$16 sps:$4 sm:$0xff]  }
  0x75   : > { %2537 = vmatpush3.bf16.msra.mxu1 %v2841_v28  ;;  %2426 = vmatprep.subr.bf16.mxu0 %v2842_v29  ;;  %v2918_v17 = vld [vmem:[%s3244_s21 + $0x184] ss:$16 sps:$4 sm:$0xff]   ;;  %v2920_v18 = vld [vmem:[%s3244_s21 + $0x18c] ss:$16 sps:$4 sm:$0xff]   ;;  %v2922_v19 = vld [vmem:[%s3244_s21 + $0x180] ss:$16 sps:$4 sm:$0xff]  }
  0x76   : > { %2538 = vmatprep.subr.bf16.mxu1 %v2843_v30  ;;  %v2923_v20 = vld [vmem:[%s3244_s21 + $0x188] ss:$16 sps:$4 sm:$0xff]   ;;  %v2924_v21 = vld [vmem:[%s3244_s21 + $0x1a4] ss:$16 sps:$4 sm:$0xff]   ;;  %v2926_v22 = vld [vmem:[%s3244_s21 + $0x1ac] ss:$16 sps:$4 sm:$0xff]  }
  0x77   : > { %v2928_v23 = vld [vmem:[%s3244_s21 + $0x1a0] ss:$16 sps:$4 sm:$0xff]   ;;  %v2929_v24 = vld [vmem:[%s3244_s21 + $0x1a8] ss:$16 sps:$4 sm:$0xff]   ;;  %v2930_v25 = vld [vmem:[%s3244_s21 + $0x1c4] ss:$16 sps:$4 sm:$0xff]  }
  0x78   : > { %2427 = vmatpush3.bf16.msra.mxu0 %v2844_v31  ;;  %v2932_v26 = vld [vmem:[%s3244_s21 + $0x1cc] ss:$16 sps:$4 sm:$0xff]   ;;  %v2934_v27 = vld [vmem:[%s3244_s21 + $0x1c0] ss:$16 sps:$4 sm:$0xff]   ;;  %v2935_v28 = vld [vmem:[%s3244_s21 + $0x1c8] ss:$16 sps:$4 sm:$0xff]  }
  0x79   : > { %2539 = vmatpush3.bf16.msra.mxu1 %v2845_v32  ;;  %v2936_v29 = vld [vmem:[%s3244_s21 + $0x1e4] ss:$16 sps:$4 sm:$0xff]   ;;  %v2938_v30 = vld [vmem:[%s3244_s21 + $0x1ec] ss:$16 sps:$4 sm:$0xff]   ;;  %v2940_v31 = vld [vmem:[%s3244_s21 + $0x1e0] ss:$16 sps:$4 sm:$0xff]  }
  0x7a   : > { %v2941_v32 = vld [vmem:[%s3244_s21 + $0x1e8] ss:$16 sps:$4 sm:$0xff]  }
  0x7b   : > { %1178 = vmatmul.mubr.bf16.vlgmr.msra.gmra.mxu0 %v2846_v33 }
  0x7c   : > { %1339 = vmatmul.mubr.bf16.vlgmr.msra.gmra.mxu1 %v2849_v35  ;;  %1185 = vmatprep.mubr.bf16.mxu0 %v2852_v37 }
  0x7d   : > { %1346 = vmatprep.mubr.bf16.mxu1 %v2854_v38 }
  0x83   : > { %1186 = vmatmul.mubr.bf16.gmra.mxu0 %v2856_v39 }
  0x84   : > { %1347 = vmatmul.mubr.bf16.gmra.mxu1 %v2857_v40  ;;  %1193 = vmatprep.mubr.bf16.mxu0 %v2858_v41  ;;  %v473_v40 = vld [vmem:[#allocation2] sm:$0xff] }
  0x85   : > { %1354 = vmatprep.mubr.bf16.mxu1 %v2860_v42 }
  0x8b   : > { %1194 = vmatmul.mubr.bf16.gmra.mxu0 %v2862_v43 }
  0x8c   : > { %1355 = vmatmul.mubr.bf16.gmra.mxu1 %v2863_v44  ;;  %1201 = vmatprep.mubr.bf16.mxu0 %v2864_v45 }
  0x8d   : > { %1362 = vmatprep.mubr.bf16.mxu1 %v2866_v46 }
  0x93   : > { %1202 = vmatmul.mubr.bf16.gmra.mxu0 %v2868_v47 }
  0x94   : > { %1363 = vmatmul.mubr.bf16.gmra.mxu1 %v2869_v48  ;;  %1209 = vmatprep.mubr.bf16.mxu0 %v2870_v49  ;;  %v474_v49 = vld [vmem:[#allocation2 + $0x8] sm:$0xff] }
  0x95   : > { %1370 = vmatprep.mubr.bf16.mxu1 %v2872_v50 }
  0x9b   : > { %1210 = vmatmul.mubr.bf16.gmra.mxu0 %v2874_v51 }
  0x9c   : > { %1371 = vmatmul.mubr.bf16.gmra.mxu1 %v2875_v52  ;;  %1217 = vmatprep.mubr.bf16.mxu0 %v2876_v53 }
  0x9d   : > { %1378 = vmatprep.mubr.bf16.mxu1 %v2878_v54 }
  0xa3   : > { %1218 = vmatmul.mubr.bf16.gmra.mxu0 %v2880_v55 }
  0xa4   : > { %1379 = vmatmul.mubr.bf16.gmra.mxu1 %v2881_v56  ;;  %1225 = vmatprep.mubr.bf16.mxu0 %v2882_v57 }
  0xa5   : > { %1386 = vmatprep.mubr.bf16.mxu1 %v2884_v58  ;;  %v475_v58 = vld [vmem:[#allocation2 + $0x10] sm:$0xff] }
  0xab   : > { %1226 = vmatmul.mubr.bf16.gmra.mxu0 %v2886_v59 }
  0xac   : > { %1387 = vmatmul.mubr.bf16.gmra.mxu1 %v2887_v60  ;;  %1233 = vmatprep.mubr.bf16.mxu0 %v2888_v61 }
  0xad   : > { %1394 = vmatprep.mubr.bf16.mxu1 %v2890_v62 }
  0xb3   : > { %1234 = vmatmul.mubr.bf16.gmra.mxu0 %v2892_v63 }
  0xb4   : > { %1395 = vmatmul.mubr.bf16.gmra.mxu1 %v2893_v0  ;;  %1241 = vmatprep.mubr.bf16.mxu0 %v2894_v1 }
  0xb5   : > { %1402 = vmatprep.mubr.bf16.mxu1 %v2896_v2 }
  0xbb   : > { %1242 = vmatmul.mubr.bf16.gmra.mxu0 %v2898_v3  ;;  %v476_v3 = vld [vmem:[#allocation2 + $0x18] sm:$0xff] }
  0xbc   : > { %1403 = vmatmul.mubr.bf16.gmra.mxu1 %v2899_v4  ;;  %1249 = vmatprep.mubr.bf16.mxu0 %v2900_v5 }
  0xbd   : > { %1410 = vmatprep.mubr.bf16.mxu1 %v2902_v6 }
  0xc3   : > { %1250 = vmatmul.mubr.bf16.gmra.mxu0 %v2904_v7 }
  0xc4   : > { %1411 = vmatmul.mubr.bf16.gmra.mxu1 %v2905_v8  ;;  %1257 = vmatprep.mubr.bf16.mxu0 %v2906_v9 }
  0xc5   : > { %1418 = vmatprep.mubr.bf16.mxu1 %v2908_v10 }
  0xcb   : > { %1258 = vmatmul.mubr.bf16.gmra.mxu0 %v2910_v11 }
  0xcc   : > { %1419 = vmatmul.mubr.bf16.gmra.mxu1 %v2911_v12  ;;  %1265 = vmatprep.mubr.bf16.mxu0 %v2912_v13  ;;  %v477_v12 = vld [vmem:[#allocation2 + $0x20] sm:$0xff] }
  0xcd   : > { %1426 = vmatprep.mubr.bf16.mxu1 %v2914_v14 }
  0xd3   : > { %1266 = vmatmul.mubr.bf16.gmra.mxu0 %v2916_v15 }
  0xd4   : > { %1427 = vmatmul.mubr.bf16.gmra.mxu1 %v2917_v16  ;;  %1273 = vmatprep.mubr.bf16.mxu0 %v2918_v17 }
  0xd5   : > { %1434 = vmatprep.mubr.bf16.mxu1 %v2920_v18 }
  0xdb   : > { %1274 = vmatmul.mubr.bf16.gmra.mxu0 %v2922_v19 }
  0xdc   : > { %1435 = vmatmul.mubr.bf16.gmra.mxu1 %v2923_v20  ;;  %1281 = vmatprep.mubr.bf16.mxu0 %v2924_v21  ;;  %v478_v21 = vld [vmem:[#allocation2 + $0x28] sm:$0xff] }
  0xdd   : > { %1442 = vmatprep.mubr.bf16.mxu1 %v2926_v22 }
  0xe3   : > { %1282 = vmatmul.mubr.bf16.gmra.mxu0 %v2928_v23 }
  0xe4   : > { %1443 = vmatmul.mubr.bf16.gmra.mxu1 %v2929_v24  ;;  %1289 = vmatprep.mubr.bf16.mxu0 %v2930_v25 }
  0xe5   : > { %1450 = vmatprep.mubr.bf16.mxu1 %v2932_v26 }
  0xeb   : > { %1290 = vmatmul.mubr.bf16.gmra.mxu0 %v2934_v27 }
  0xec   : > { %1451 = vmatmul.mubr.bf16.gmra.mxu1 %v2935_v28  ;;  %1297 = vmatprep.mubr.bf16.mxu0 %v2936_v29 }
  0xed   : > { %1458 = vmatprep.mubr.bf16.mxu1 %v2938_v30  ;;  %v479_v30 = vld [vmem:[#allocation2 + $0x30] sm:$0xff] }
  0xf3   : > { %1298 = vmatmul.mubr.bf16.gmra.mxu0 %v2940_v31 }
  0xf4   : > { %1459 = vmatmul.mubr.bf16.gmra.mxu1 %v2941_v32 }
 0x13b   : > { %v2428_v33 = vpop.f32.mrf.mxu0 }
 0x13c   : > { %v2540_v34 = vpop.f32.mrf.mxu1 }
 0x13d   : > { %v2429_v35 = vpop.f32.mrf.mxu0 }
 0x13e   : > { %v2430_v36 = vadd.f32 %v2429_v35, %v2428_v33  ;;  %v2541_v37 = vpop.f32.mrf.mxu1 }
 0x13f   : > { %v2542_v38 = vadd.f32 %v2541_v37, %v2540_v34  ;;  %v2431_v39 = vpop.f32.mrf.mxu0 }
 0x140   : > { %v2543_v41 = vpop.f32.mrf.mxu1 }
 0x141   : > { %v1341_v42 = vadd.f32 %v2542_v38, %v2430_v36  ;;  %v2432_v43 = vpop.f32.mrf.mxu0 }
 0x142   : > { %v2433_v44 = vadd.f32 %v2432_v43, %v2431_v39  ;;  %v2544_v45 = vpop.f32.mrf.mxu1  ;;  %v480_v39 = vld [vmem:[#allocation2 + $0x38] sm:$0xff] }
 0x143   : > { %v1467_v46 = vadd.f32 %v1341_v42, %v473_v40  ;;  %v2545_v47 = vadd.f32 %v2544_v45, %v2543_v41  ;;  %v2434_v48 = vpop.f32.mrf.mxu0 }
 0x144   : > { %v2546_v50 = vpop.f32.mrf.mxu1 }
 0x145   : > { %1500 = vst.msk [vmem:[#allocation2] sm:$0xff] %vm1499_vm1, %v1467_v46  ;;  %v1344_v51 = vadd.f32 %v2545_v47, %v2433_v44  ;;  %v2435_v52 = vpop.f32.mrf.mxu0 }
 0x146   : > { %v2436_v53 = vadd.f32 %v2435_v52, %v2434_v48  ;;  %v2547_v54 = vpop.f32.mrf.mxu1  ;;  %v481_v48 = vld [vmem:[#allocation2 + $0x40] sm:$0xff] }
 0x147   : > { %v1468_v55 = vadd.f32 %v1344_v51, %v474_v49  ;;  %v2548_v56 = vadd.f32 %v2547_v54, %v2546_v50  ;;  %v2437_v57 = vpop.f32.mrf.mxu0 }
 0x148   : > { %v2549_v59 = vpop.f32.mrf.mxu1 }
 0x149   : > { %1501 = vst.msk [vmem:[#allocation2 + $0x8] sm:$0xff] %vm1499_vm1, %v1468_v55  ;;  %v1349_v60 = vadd.f32 %v2548_v56, %v2436_v53  ;;  %v2438_v61 = vpop.f32.mrf.mxu0 }
 0x14a   : > { %v2439_v62 = vadd.f32 %v2438_v61, %v2437_v57  ;;  %v2550_v63 = vpop.f32.mrf.mxu1  ;;  %v482_v57 = vld [vmem:[#allocation2 + $0x48] sm:$0xff] }
 0x14b   : > { %v1469_v0 = vadd.f32 %v1349_v60, %v475_v58  ;;  %v2551_v1 = vadd.f32 %v2550_v63, %v2549_v59  ;;  %v2440_v2 = vpop.f32.mrf.mxu0 }
 0x14c   : > { %v2552_v4 = vpop.f32.mrf.mxu1 }
 0x14d   : > { %1502 = vst.msk [vmem:[#allocation2 + $0x10] sm:$0xff] %vm1499_vm1, %v1469_v0  ;;  %v1352_v5 = vadd.f32 %v2551_v1, %v2439_v62  ;;  %v2441_v6 = vpop.f32.mrf.mxu0 }
 0x14e   : > { %v2442_v7 = vadd.f32 %v2441_v6, %v2440_v2  ;;  %v2553_v8 = vpop.f32.mrf.mxu1  ;;  %v483_v2 = vld [vmem:[#allocation2 + $0x50] sm:$0xff] }
 0x14f   : > { %v1470_v9 = vadd.f32 %v1352_v5, %v476_v3  ;;  %v2554_v10 = vadd.f32 %v2553_v8, %v2552_v4  ;;  %v2443_v11 = vpop.f32.mrf.mxu0 }
 0x150   : > { %v2555_v13 = vpop.f32.mrf.mxu1 }
 0x151   : > { %1503 = vst.msk [vmem:[#allocation2 + $0x18] sm:$0xff] %vm1499_vm1, %v1470_v9  ;;  %v1357_v14 = vadd.f32 %v2554_v10, %v2442_v7  ;;  %v2444_v15 = vpop.f32.mrf.mxu0 }
 0x152   : > { %v2445_v16 = vadd.f32 %v2444_v15, %v2443_v11  ;;  %v2556_v17 = vpop.f32.mrf.mxu1  ;;  %v484_v11 = vld [vmem:[#allocation2 + $0x58] sm:$0xff] }
 0x153   : > { %v1471_v18 = vadd.f32 %v1357_v14, %v477_v12  ;;  %v2557_v19 = vadd.f32 %v2556_v17, %v2555_v13  ;;  %v2446_v20 = vpop.f32.mrf.mxu0 }
 0x154   : > { %v2558_v22 = vpop.f32.mrf.mxu1 }
 0x155   : > { %1504 = vst.msk [vmem:[#allocation2 + $0x20] sm:$0xff] %vm1499_vm1, %v1471_v18  ;;  %v1360_v23 = vadd.f32 %v2557_v19, %v2445_v16  ;;  %v2447_v24 = vpop.f32.mrf.mxu0 }
 0x156   : > { %v2448_v25 = vadd.f32 %v2447_v24, %v2446_v20  ;;  %v2559_v26 = vpop.f32.mrf.mxu1  ;;  %v485_v20 = vld [vmem:[#allocation2 + $0x60] sm:$0xff] }
 0x157   : > { %v1472_v27 = vadd.f32 %v1360_v23, %v478_v21  ;;  %v2560_v28 = vadd.f32 %v2559_v26, %v2558_v22  ;;  %v2449_v29 = vpop.f32.mrf.mxu0 }
 0x158   : > { %v2561_v31 = vpop.f32.mrf.mxu1 }
 0x159   : > { %1505 = vst.msk [vmem:[#allocation2 + $0x28] sm:$0xff] %vm1499_vm1, %v1472_v27  ;;  %v1365_v32 = vadd.f32 %v2560_v28, %v2448_v25  ;;  %v2450_v33 = vpop.f32.mrf.mxu0 }
 0x15a   : > { %v2451_v34 = vadd.f32 %v2450_v33, %v2449_v29  ;;  %v2562_v35 = vpop.f32.mrf.mxu1  ;;  %v486_v29 = vld [vmem:[#allocation2 + $0x68] sm:$0xff] }
 0x15b   : > { %v1473_v36 = vadd.f32 %v1365_v32, %v479_v30  ;;  %v2563_v37 = vadd.f32 %v2562_v35, %v2561_v31  ;;  %v2452_v38 = vpop.f32.mrf.mxu0 }
 0x15c   : > { %v2564_v40 = vpop.f32.mrf.mxu1 }
 0x15d   : > { %1506 = vst.msk [vmem:[#allocation2 + $0x30] sm:$0xff] %vm1499_vm1, %v1473_v36  ;;  %v1368_v41 = vadd.f32 %v2563_v37, %v2451_v34  ;;  %v2453_v42 = vpop.f32.mrf.mxu0 }
 0x15e   : > { %v2454_v43 = vadd.f32 %v2453_v42, %v2452_v38  ;;  %v2565_v44 = vpop.f32.mrf.mxu1  ;;  %v487_v38 = vld [vmem:[#allocation2 + $0x70] sm:$0xff] }
 0x15f   : > { %v1474_v45 = vadd.f32 %v1368_v41, %v480_v39  ;;  %v2566_v46 = vadd.f32 %v2565_v44, %v2564_v40  ;;  %v2455_v47 = vpop.f32.mrf.mxu0 }
 0x160   : > { %v2567_v49 = vpop.f32.mrf.mxu1 }
 0x161   : > { %1507 = vst.msk [vmem:[#allocation2 + $0x38] sm:$0xff] %vm1499_vm1, %v1474_v45  ;;  %v1373_v50 = vadd.f32 %v2566_v46, %v2454_v43  ;;  %v2456_v51 = vpop.f32.mrf.mxu0 }
 0x162   : > { %v2457_v52 = vadd.f32 %v2456_v51, %v2455_v47  ;;  %v2568_v53 = vpop.f32.mrf.mxu1  ;;  %v488_v47 = vld [vmem:[#allocation2 + $0x78] sm:$0xff] }
 0x163   : > { %v1475_v54 = vadd.f32 %v1373_v50, %v481_v48  ;;  %v2569_v55 = vadd.f32 %v2568_v53, %v2567_v49  ;;  %v2458_v56 = vpop.f32.mrf.mxu0 }
 0x164   : > { %v2570_v58 = vpop.f32.mrf.mxu1 }
 0x165   : > { %1508 = vst.msk [vmem:[#allocation2 + $0x40] sm:$0xff] %vm1499_vm1, %v1475_v54  ;;  %v1376_v59 = vadd.f32 %v2569_v55, %v2457_v52  ;;  %v2459_v60 = vpop.f32.mrf.mxu0 }
 0x166   : > { %v2460_v61 = vadd.f32 %v2459_v60, %v2458_v56  ;;  %v2571_v62 = vpop.f32.mrf.mxu1  ;;  %v489_v56 = vld [vmem:[#allocation2 + $0x80] sm:$0xff] }
 0x167   : > { %v1476_v63 = vadd.f32 %v1376_v59, %v482_v57  ;;  %v2572_v0 = vadd.f32 %v2571_v62, %v2570_v58  ;;  %v2461_v1 = vpop.f32.mrf.mxu0 }
 0x168   : > { %v2573_v3 = vpop.f32.mrf.mxu1 }
 0x169   : > { %1509 = vst.msk [vmem:[#allocation2 + $0x48] sm:$0xff] %vm1499_vm1, %v1476_v63  ;;  %v1381_v4 = vadd.f32 %v2572_v0, %v2460_v61  ;;  %v2462_v5 = vpop.f32.mrf.mxu0 }
 0x16a   : > { %v2463_v6 = vadd.f32 %v2462_v5, %v2461_v1  ;;  %v2574_v7 = vpop.f32.mrf.mxu1  ;;  %v490_v1 = vld [vmem:[#allocation2 + $0x88] sm:$0xff] }
 0x16b   : > { %v1477_v8 = vadd.f32 %v1381_v4, %v483_v2  ;;  %v2575_v9 = vadd.f32 %v2574_v7, %v2573_v3  ;;  %v2464_v10 = vpop.f32.mrf.mxu0 }
 0x16c   : > { %v2576_v12 = vpop.f32.mrf.mxu1 }
 0x16d   : > { %1510 = vst.msk [vmem:[#allocation2 + $0x50] sm:$0xff] %vm1499_vm1, %v1477_v8  ;;  %v1384_v13 = vadd.f32 %v2575_v9, %v2463_v6  ;;  %v2465_v14 = vpop.f32.mrf.mxu0 }
 0x16e   : > { %v2466_v15 = vadd.f32 %v2465_v14, %v2464_v10  ;;  %v2577_v16 = vpop.f32.mrf.mxu1  ;;  %v491_v10 = vld [vmem:[#allocation2 + $0x90] sm:$0xff] }
 0x16f   : > { %v1478_v17 = vadd.f32 %v1384_v13, %v484_v11  ;;  %v2578_v18 = vadd.f32 %v2577_v16, %v2576_v12  ;;  %v2467_v19 = vpop.f32.mrf.mxu0 }
 0x170   : > { %v2579_v21 = vpop.f32.mrf.mxu1 }
 0x171   : > { %1511 = vst.msk [vmem:[#allocation2 + $0x58] sm:$0xff] %vm1499_vm1, %v1478_v17  ;;  %v1389_v22 = vadd.f32 %v2578_v18, %v2466_v15  ;;  %v2468_v23 = vpop.f32.mrf.mxu0 }
 0x172   : > { %v2469_v24 = vadd.f32 %v2468_v23, %v2467_v19  ;;  %v2580_v25 = vpop.f32.mrf.mxu1  ;;  %v492_v19 = vld [vmem:[#allocation2 + $0x98] sm:$0xff] }
 0x173   : > { %v1479_v26 = vadd.f32 %v1389_v22, %v485_v20  ;;  %v2581_v27 = vadd.f32 %v2580_v25, %v2579_v21  ;;  %v2470_v28 = vpop.f32.mrf.mxu0 }
 0x174   : > { %v2582_v30 = vpop.f32.mrf.mxu1 }
 0x175   : > { %1512 = vst.msk [vmem:[#allocation2 + $0x60] sm:$0xff] %vm1499_vm1, %v1479_v26  ;;  %v1392_v31 = vadd.f32 %v2581_v27, %v2469_v24  ;;  %v2471_v32 = vpop.f32.mrf.mxu0 }
 0x176   : > { %v2472_v33 = vadd.f32 %v2471_v32, %v2470_v28  ;;  %v2583_v34 = vpop.f32.mrf.mxu1  ;;  %v493_v28 = vld [vmem:[#allocation2 + $0xa0] sm:$0xff] }
 0x177   : > { %v1480_v35 = vadd.f32 %v1392_v31, %v486_v29  ;;  %v2584_v36 = vadd.f32 %v2583_v34, %v2582_v30  ;;  %v2473_v37 = vpop.f32.mrf.mxu0 }
 0x178   : > { %v2585_v39 = vpop.f32.mrf.mxu1 }
 0x179   : > { %1513 = vst.msk [vmem:[#allocation2 + $0x68] sm:$0xff] %vm1499_vm1, %v1480_v35  ;;  %v1397_v40 = vadd.f32 %v2584_v36, %v2472_v33  ;;  %v2474_v41 = vpop.f32.mrf.mxu0 }
 0x17a   : > { %v2475_v42 = vadd.f32 %v2474_v41, %v2473_v37  ;;  %v2586_v43 = vpop.f32.mrf.mxu1  ;;  %v494_v37 = vld [vmem:[#allocation2 + $0xa8] sm:$0xff] }
 0x17b   : > { %v1481_v44 = vadd.f32 %v1397_v40, %v487_v38  ;;  %v2587_v45 = vadd.f32 %v2586_v43, %v2585_v39  ;;  %v2476_v46 = vpop.f32.mrf.mxu0 }
 0x17c   : > { %v2588_v48 = vpop.f32.mrf.mxu1 }
 0x17d   : > { %1514 = vst.msk [vmem:[#allocation2 + $0x70] sm:$0xff] %vm1499_vm1, %v1481_v44  ;;  %v1400_v49 = vadd.f32 %v2587_v45, %v2475_v42  ;;  %v2477_v50 = vpop.f32.mrf.mxu0 }
 0x17e   : > { %v2478_v51 = vadd.f32 %v2477_v50, %v2476_v46  ;;  %v2589_v52 = vpop.f32.mrf.mxu1  ;;  %v495_v46 = vld [vmem:[#allocation2 + $0xb0] sm:$0xff] }
 0x17f   : > { %v1482_v53 = vadd.f32 %v1400_v49, %v488_v47  ;;  %v2590_v54 = vadd.f32 %v2589_v52, %v2588_v48  ;;  %v2479_v55 = vpop.f32.mrf.mxu0 }
 0x180   : > { %v2591_v57 = vpop.f32.mrf.mxu1 }
 0x181   : > { %1515 = vst.msk [vmem:[#allocation2 + $0x78] sm:$0xff] %vm1499_vm1, %v1482_v53  ;;  %v1405_v58 = vadd.f32 %v2590_v54, %v2478_v51  ;;  %v2480_v59 = vpop.f32.mrf.mxu0 }
 0x182   : > { %v2481_v60 = vadd.f32 %v2480_v59, %v2479_v55  ;;  %v2592_v61 = vpop.f32.mrf.mxu1  ;;  %v496_v55 = vld [vmem:[#allocation2 + $0xb8] sm:$0xff] }
 0x183   : > { %v1483_v62 = vadd.f32 %v1405_v58, %v489_v56  ;;  %v2593_v63 = vadd.f32 %v2592_v61, %v2591_v57  ;;  %v2482_v0 = vpop.f32.mrf.mxu0 }
 0x184   : > { %v2594_v2 = vpop.f32.mrf.mxu1 }
 0x185   : > { %1516 = vst.msk [vmem:[#allocation2 + $0x80] sm:$0xff] %vm1499_vm1, %v1483_v62  ;;  %v1408_v3 = vadd.f32 %v2593_v63, %v2481_v60  ;;  %v2483_v4 = vpop.f32.mrf.mxu0 }
 0x186   : > { %v2484_v5 = vadd.f32 %v2483_v4, %v2482_v0  ;;  %v2595_v6 = vpop.f32.mrf.mxu1  ;;  %v497_v0 = vld [vmem:[#allocation2 + $0xc0] sm:$0xff] }
 0x187   : > { %v1484_v7 = vadd.f32 %v1408_v3, %v490_v1  ;;  %v2596_v8 = vadd.f32 %v2595_v6, %v2594_v2  ;;  %v2485_v9 = vpop.f32.mrf.mxu0 }
 0x188   : > { %v2597_v11 = vpop.f32.mrf.mxu1 }
 0x189   : > { %1517 = vst.msk [vmem:[#allocation2 + $0x88] sm:$0xff] %vm1499_vm1, %v1484_v7  ;;  %v1413_v12 = vadd.f32 %v2596_v8, %v2484_v5  ;;  %v2486_v13 = vpop.f32.mrf.mxu0 }
 0x18a   : > { %v2487_v14 = vadd.f32 %v2486_v13, %v2485_v9  ;;  %v2598_v15 = vpop.f32.mrf.mxu1  ;;  %v498_v9 = vld [vmem:[#allocation2 + $0xc8] sm:$0xff] }
 0x18b   : > { %v1485_v16 = vadd.f32 %v1413_v12, %v491_v10  ;;  %v2599_v17 = vadd.f32 %v2598_v15, %v2597_v11  ;;  %v2488_v18 = vpop.f32.mrf.mxu0 }
 0x18c   : > { %v2600_v20 = vpop.f32.mrf.mxu1 }
 0x18d   : > { %1518 = vst.msk [vmem:[#allocation2 + $0x90] sm:$0xff] %vm1499_vm1, %v1485_v16  ;;  %v1416_v21 = vadd.f32 %v2599_v17, %v2487_v14  ;;  %v2489_v22 = vpop.f32.mrf.mxu0 }
 0x18e   : > { %v2490_v23 = vadd.f32 %v2489_v22, %v2488_v18  ;;  %v2601_v24 = vpop.f32.mrf.mxu1  ;;  %v499_v18 = vld [vmem:[#allocation2 + $0xd0] sm:$0xff] }
 0x18f   : > { %v1486_v25 = vadd.f32 %v1416_v21, %v492_v19  ;;  %v2602_v26 = vadd.f32 %v2601_v24, %v2600_v20  ;;  %v2491_v27 = vpop.f32.mrf.mxu0 }
 0x190   : > { %v2603_v29 = vpop.f32.mrf.mxu1 }
 0x191   : > { %1519 = vst.msk [vmem:[#allocation2 + $0x98] sm:$0xff] %vm1499_vm1, %v1486_v25  ;;  %v1421_v30 = vadd.f32 %v2602_v26, %v2490_v23  ;;  %v2492_v31 = vpop.f32.mrf.mxu0 }
 0x192   : > { %v2493_v32 = vadd.f32 %v2492_v31, %v2491_v27  ;;  %v2604_v33 = vpop.f32.mrf.mxu1  ;;  %v500_v27 = vld [vmem:[#allocation2 + $0xd8] sm:$0xff] }
 0x193   : > { %v1487_v34 = vadd.f32 %v1421_v30, %v493_v28  ;;  %v2605_v35 = vadd.f32 %v2604_v33, %v2603_v29  ;;  %v2494_v36 = vpop.f32.mrf.mxu0 }
 0x194   : > { %v2606_v38 = vpop.f32.mrf.mxu1 }
 0x195   : > { %1520 = vst.msk [vmem:[#allocation2 + $0xa0] sm:$0xff] %vm1499_vm1, %v1487_v34  ;;  %v1424_v39 = vadd.f32 %v2605_v35, %v2493_v32  ;;  %v2495_v40 = vpop.f32.mrf.mxu0 }
 0x196   : > { %v2496_v41 = vadd.f32 %v2495_v40, %v2494_v36  ;;  %v2607_v42 = vpop.f32.mrf.mxu1  ;;  %v501_v36 = vld [vmem:[#allocation2 + $0xe0] sm:$0xff] }
 0x197   : > { %v1488_v43 = vadd.f32 %v1424_v39, %v494_v37  ;;  %v2608_v44 = vadd.f32 %v2607_v42, %v2606_v38  ;;  %v2497_v45 = vpop.f32.mrf.mxu0 }
 0x198   : > { %v2609_v47 = vpop.f32.mrf.mxu1 }
 0x199   : > { %1521 = vst.msk [vmem:[#allocation2 + $0xa8] sm:$0xff] %vm1499_vm1, %v1488_v43  ;;  %v1429_v48 = vadd.f32 %v2608_v44, %v2496_v41  ;;  %v2498_v49 = vpop.f32.mrf.mxu0 }
 0x19a   : > { %v2499_v50 = vadd.f32 %v2498_v49, %v2497_v45  ;;  %v2610_v51 = vpop.f32.mrf.mxu1  ;;  %v502_v45 = vld [vmem:[#allocation2 + $0xe8] sm:$0xff] }
 0x19b   : > { %v1489_v52 = vadd.f32 %v1429_v48, %v495_v46  ;;  %v2611_v53 = vadd.f32 %v2610_v51, %v2609_v47  ;;  %v2500_v54 = vpop.f32.mrf.mxu0 }
 0x19c   : > { %v2612_v56 = vpop.f32.mrf.mxu1 }
 0x19d   : > { %1522 = vst.msk [vmem:[#allocation2 + $0xb0] sm:$0xff] %vm1499_vm1, %v1489_v52  ;;  %v1432_v57 = vadd.f32 %v2611_v53, %v2499_v50  ;;  %v2501_v58 = vpop.f32.mrf.mxu0 }
 0x19e   : > { %v2502_v59 = vadd.f32 %v2501_v58, %v2500_v54  ;;  %v2613_v60 = vpop.f32.mrf.mxu1  ;;  %v503_v54 = vld [vmem:[#allocation2 + $0xf0] sm:$0xff] }
 0x19f   : > { %v1490_v61 = vadd.f32 %v1432_v57, %v496_v55  ;;  %v2614_v62 = vadd.f32 %v2613_v60, %v2612_v56  ;;  %v2503_v63 = vpop.f32.mrf.mxu0 }
 0x1a0   : > { %v2615_v1 = vpop.f32.mrf.mxu1 }
 0x1a1   : > { %1523 = vst.msk [vmem:[#allocation2 + $0xb8] sm:$0xff] %vm1499_vm1, %v1490_v61  ;;  %v1437_v2 = vadd.f32 %v2614_v62, %v2502_v59  ;;  %v2504_v3 = vpop.f32.mrf.mxu0  ;;  %v504_v62 = vld [vmem:[#allocation2 + $0xf8] sm:$0xff] }
 0x1a2   : > { %v2505_v4 = vadd.f32 %v2504_v3, %v2503_v63  ;;  %v2616_v5 = vpop.f32.mrf.mxu1 }
 0x1a3   : > { %v1491_v6 = vadd.f32 %v1437_v2, %v497_v0  ;;  %v2617_v7 = vadd.f32 %v2616_v5, %v2615_v1  ;;  %v2506_v8 = vpop.f32.mrf.mxu0 }
 0x1a4   : > { %v2618_v10 = vpop.f32.mrf.mxu1 }
 0x1a5   : > { %1524 = vst.msk [vmem:[#allocation2 + $0xc0] sm:$0xff] %vm1499_vm1, %v1491_v6  ;;  %v1440_v11 = vadd.f32 %v2617_v7, %v2505_v4  ;;  %v2507_v12 = vpop.f32.mrf.mxu0 }
 0x1a6   : > { %v2508_v13 = vadd.f32 %v2507_v12, %v2506_v8  ;;  %v2619_v14 = vpop.f32.mrf.mxu1 }
 0x1a7   : > { %v1492_v15 = vadd.f32 %v1440_v11, %v498_v9  ;;  %v2620_v16 = vadd.f32 %v2619_v14, %v2618_v10  ;;  %v2509_v17 = vpop.f32.mrf.mxu0 }
 0x1a8   : > { %v2621_v19 = vpop.f32.mrf.mxu1 }
 0x1a9   : > { %1525 = vst.msk [vmem:[#allocation2 + $0xc8] sm:$0xff] %vm1499_vm1, %v1492_v15  ;;  %v1445_v20 = vadd.f32 %v2620_v16, %v2508_v13  ;;  %v2510_v21 = vpop.f32.mrf.mxu0 }
 0x1aa   : > { %v2511_v22 = vadd.f32 %v2510_v21, %v2509_v17  ;;  %v2622_v23 = vpop.f32.mrf.mxu1 }
 0x1ab   : > { %v1493_v24 = vadd.f32 %v1445_v20, %v499_v18  ;;  %v2623_v25 = vadd.f32 %v2622_v23, %v2621_v19  ;;  %v2512_v26 = vpop.f32.mrf.mxu0 }
 0x1ac   : > { %v2624_v28 = vpop.f32.mrf.mxu1 }
 0x1ad   : > { %1526 = vst.msk [vmem:[#allocation2 + $0xd0] sm:$0xff] %vm1499_vm1, %v1493_v24  ;;  %v1448_v29 = vadd.f32 %v2623_v25, %v2511_v22  ;;  %v2513_v30 = vpop.f32.mrf.mxu0 }
 0x1ae   : > { %v2514_v31 = vadd.f32 %v2513_v30, %v2512_v26  ;;  %v2625_v32 = vpop.f32.mrf.mxu1 }
 0x1af   : > { %v1494_v33 = vadd.f32 %v1448_v29, %v500_v27  ;;  %v2626_v34 = vadd.f32 %v2625_v32, %v2624_v28  ;;  %v2515_v35 = vpop.f32.mrf.mxu0 }
 0x1b0   : > { %v2627_v37 = vpop.f32.mrf.mxu1 }
 0x1b1   : > { %1527 = vst.msk [vmem:[#allocation2 + $0xd8] sm:$0xff] %vm1499_vm1, %v1494_v33  ;;  %v1453_v38 = vadd.f32 %v2626_v34, %v2514_v31  ;;  %v2516_v39 = vpop.f32.mrf.mxu0 }
 0x1b2   : > { %v2517_v40 = vadd.f32 %v2516_v39, %v2515_v35  ;;  %v2628_v41 = vpop.f32.mrf.mxu1 }
 0x1b3   : > { %v1495_v42 = vadd.f32 %v1453_v38, %v501_v36  ;;  %v2629_v43 = vadd.f32 %v2628_v41, %v2627_v37  ;;  %v2518_v44 = vpop.f32.mrf.mxu0 }
 0x1b4   : > { %v2630_v46 = vpop.f32.mrf.mxu1 }
 0x1b5   : > { %1528 = vst.msk [vmem:[#allocation2 + $0xe0] sm:$0xff] %vm1499_vm1, %v1495_v42  ;;  %v1456_v47 = vadd.f32 %v2629_v43, %v2517_v40  ;;  %v2519_v48 = vpop.f32.mrf.mxu0 }
 0x1b6   : > { %v2520_v49 = vadd.f32 %v2519_v48, %v2518_v44  ;;  %v2631_v50 = vpop.f32.mrf.mxu1 }
 0x1b7   : > { %v1496_v51 = vadd.f32 %v1456_v47, %v502_v45  ;;  %v2632_v52 = vadd.f32 %v2631_v50, %v2630_v46  ;;  %v2521_v53 = vpop.f32.mrf.mxu0 }
 0x1b8   : > { %v2633_v55 = vpop.f32.mrf.mxu1 }
 0x1b9   : > { %1529 = vst.msk [vmem:[#allocation2 + $0xe8] sm:$0xff] %vm1499_vm1, %v1496_v51  ;;  %v1461_v56 = vadd.f32 %v2632_v52, %v2520_v49  ;;  %v2522_v57 = vpop.f32.mrf.mxu0 }
 0x1ba   : > { %v2523_v58 = vadd.f32 %v2522_v57, %v2521_v53  ;;  %v2634_v59 = vpop.f32.mrf.mxu1 }
 0x1bb   : > { %v1497_v60 = vadd.f32 %v1461_v56, %v503_v54  ;;  %v2635_v61 = vadd.f32 %v2634_v59, %v2633_v55 }
 0x1bd   : > { %1530 = vst.msk [vmem:[#allocation2 + $0xf0] sm:$0xff] %vm1499_vm1, %v1497_v60  ;;  %v1464_v63 = vadd.f32 %v2635_v61, %v2523_v58  ;;  %1535 = sbr.rel (%p2375_p13) target bundleno = 836 (0x344), region = 71 }
 0x1bf   : > { %v1498_v0 = vadd.f32 %v1464_v63, %v504_v62 }
 0x1c1   : > { %1531 = vst.msk [vmem:[#allocation2 + $0xf8] sm:$0xff] %vm1499_vm1, %v1498_v0 }
 0x1c2   : > { %v1537_v1 = vld [vmem:[%s3237_s13 + $0x8] sm:$0xff]  ;;  %v1536_v2 = vld [vmem:[%s3237_s13] sm:$0xff]  ;;  %v3001_v3 = vmov 0   ;;  %v1554_v6 = vld [vmem:[%s3237_s13 + $0x90] sm:$0xff] }
 0x1c3   : > { %2943 = vset.pattern.permute.xlu1 %v3001_v3  ;;  %2942 = vset.pattern.permute.xlu0 %v3001_v3  ;;  %v1553_v4 = vld [vmem:[%s3237_s13 + $0x88] sm:$0xff]  ;;  %v1552_v5 = vld [vmem:[%s3237_s13 + $0x80] sm:$0xff]  ;;  %v1538_v7 = vld [vmem:[%s3237_s13 + $0x10] sm:$0xff] }
 0x1c4   : > { %1607 = vperm.xlu1 %2943, %v1537_v1   ;;  %1602 = vperm.xlu0 %2942, %v1536_v2   ;;  %v1799_v8 = vld [vmem:[%s3589_s3 + $0x38] sm:$0xff]  ;;  %v1798_v11 = vld [vmem:[%s3589_s3 + $0x30] sm:$0xff]  ;;  %v1797_v12 = vld [vmem:[%s3589_s3 + $0x28] sm:$0xff] }
 0x1c5   : > { %v1555_v9 = vld [vmem:[%s3237_s13 + $0x98] sm:$0xff]  ;;  %2676 = vmatprep.subr.mxu0 %v1799_v8  ;;  %2740 = vmatprep.subr.mxu1 %v1799_v8  ;;  %v1556_v13 = vld [vmem:[%s3237_s13 + $0xa0] sm:$0xff]  ;;  %v1557_v17 = vld [vmem:[%s3237_s13 + $0xa8] sm:$0xff] }
 0x1c6   : > { %v1539_v10 = vld [vmem:[%s3237_s13 + $0x18] sm:$0xff]  ;;  %2677 = vmatpush3.msra.mxu0 %v1799_v8  ;;  %2748 = vmatpush3.msra.mxu1 %v1799_v8  ;;  %v1540_v14 = vld [vmem:[%s3237_s13 + $0x20] sm:$0xff]  ;;  %v1541_v18 = vld [vmem:[%s3237_s13 + $0x28] sm:$0xff] }
 0x1c7   : > { %2678 = vmatprep.subr.mxu0 %v1798_v11  ;;  %2741 = vmatprep.subr.mxu1 %v1798_v11  ;;  %v1796_v15 = vld [vmem:[%s3589_s3 + $0x20] sm:$0xff]  ;;  %v1795_v16 = vld [vmem:[%s3589_s3 + $0x18] sm:$0xff]  ;;  %v1794_v19 = vld [vmem:[%s3589_s3 + $0x10] sm:$0xff] }
 0x1c8   : > { %1687 = vperm.xlu1 %2943, %v1553_v4   ;;  %1682 = vperm.xlu0 %2942, %v1552_v5   ;;  %v1558_v20 = vld [vmem:[%s3237_s13 + $0xb0] sm:$0xff]  ;;  %v1793_v22 = vld [vmem:[%s3589_s3 + $0x8] sm:$0xff]  ;;  %v1792_v23 = vld [vmem:[%s3589_s3] sm:$0xff] }
 0x1c9   : > { %2679 = vmatpush3.msra.mxu0 %v1798_v11  ;;  %2749 = vmatpush3.msra.mxu1 %v1798_v11  ;;  %v1542_v21 = vld [vmem:[%s3237_s13 + $0x30] sm:$0xff]  ;;  %v1559_v24 = vld [vmem:[%s3237_s13 + $0xb8] sm:$0xff]  ;;  %v1560_v26 = vld [vmem:[%s3237_s13 + $0xc0] sm:$0xff] }
 0x1ca   : > { %2680 = vmatprep.subr.mxu0 %v1797_v12  ;;  %2742 = vmatprep.subr.mxu1 %v1797_v12  ;;  %v1543_v25 = vld [vmem:[%s3237_s13 + $0x38] sm:$0xff]  ;;  %v1544_v27 = vld [vmem:[%s3237_s13 + $0x40] sm:$0xff]  ;;  %v1561_v28 = vld [vmem:[%s3237_s13 + $0xc8] sm:$0xff] }
 0x1cb   : > { %2681 = vmatpush3.msra.mxu0 %v1797_v12  ;;  %2750 = vmatpush3.msra.mxu1 %v1797_v12  ;;  %v1545_v29 = vld [vmem:[%s3237_s13 + $0x48] sm:$0xff]  ;;  %v1562_v30 = vld [vmem:[%s3237_s13 + $0xd0] sm:$0xff]  ;;  %v1563_v32 = vld [vmem:[%s3237_s13 + $0xd8] sm:$0xff] }
 0x1cc   : > { %1692 = vperm.xlu1 %2943, %v1554_v6   ;;  %1612 = vperm.xlu0 %2942, %v1538_v7   ;;  %v1546_v31 = vld [vmem:[%s3237_s13 + $0x50] sm:$0xff]  ;;  %v1547_v33 = vld [vmem:[%s3237_s13 + $0x58] sm:$0xff]  ;;  %v1564_v34 = vld [vmem:[%s3237_s13 + $0xe0] sm:$0xff] }
 0x1cd   : > { %2682 = vmatprep.subr.mxu0 %v1796_v15  ;;  %2743 = vmatprep.subr.mxu1 %v1796_v15  ;;  %v1548_v35 = vld [vmem:[%s3237_s13 + $0x60] sm:$0xff]  ;;  %v1565_v36 = vld [vmem:[%s3237_s13 + $0xe8] sm:$0xff]  ;;  %v1566_v38 = vld [vmem:[%s3237_s13 + $0xf0] sm:$0xff] }
 0x1ce   : > { %2683 = vmatpush3.msra.mxu0 %v1796_v15  ;;  %2751 = vmatpush3.msra.mxu1 %v1796_v15  ;;  %v1549_v37 = vld [vmem:[%s3237_s13 + $0x68] sm:$0xff]  ;;  %v1550_v39 = vld [vmem:[%s3237_s13 + $0x70] sm:$0xff]  ;;  %v1567_v40 = vld [vmem:[%s3237_s13 + $0xf8] sm:$0xff] }
 0x1cf   : > { %2684 = vmatprep.subr.mxu0 %v1795_v16  ;;  %2744 = vmatprep.subr.mxu1 %v1795_v16  ;;  %v1551_v41 = vld [vmem:[%s3237_s13 + $0x78] sm:$0xff]  ;;  %v1569_v42 = vld [vmem:[#allocation2 + $0x8] sm:$0xff]  ;;  %v1568_v43 = vld [vmem:[#allocation2] sm:$0xff] }
 0x1d0   : > { %1697 = vperm.xlu1 %2943, %v1555_v9   ;;  %1617 = vperm.xlu0 %2942, %v1539_v10   ;;  %v1585_v48 = vld [vmem:[#allocation2 + $0x88] sm:$0xff]  ;;  %v1584_v49 = vld [vmem:[#allocation2 + $0x80] sm:$0xff]  ;;  %v1586_v54 = vld [vmem:[#allocation2 + $0x90] sm:$0xff] }
 0x1d1   : > { %2685 = vmatpush3.msra.mxu0 %v1795_v16  ;;  %2752 = vmatpush3.msra.mxu1 %v1795_v16  ;;  %v1570_v55 = vld [vmem:[#allocation2 + $0x10] sm:$0xff]  ;;  %v1587_v60 = vld [vmem:[#allocation2 + $0x98] sm:$0xff]  ;;  %v1588_v2 = vld [vmem:[#allocation2 + $0xa0] sm:$0xff] }
 0x1d2   : > { %2686 = vmatprep.subr.mxu0 %v1794_v19  ;;  %2745 = vmatprep.subr.mxu1 %v1794_v19  ;;  %v1571_v61 = vld [vmem:[#allocation2 + $0x18] sm:$0xff]  ;;  %v1572_v3 = vld [vmem:[#allocation2 + $0x20] sm:$0xff]  ;;  %v1589_v8 = vld [vmem:[#allocation2 + $0xa8] sm:$0xff] }
 0x1d3   : > { %2687 = vmatpush3.msra.mxu0 %v1794_v19  ;;  %2753 = vmatpush3.msra.mxu1 %v1794_v19  ;;  %v1573_v9 = vld [vmem:[#allocation2 + $0x28] sm:$0xff]  ;;  %v1574_v15 = vld [vmem:[#allocation2 + $0x30] sm:$0xff] }
 0x1d4   : > { %1702 = vperm.xlu1 %2943, %v1556_v13   ;;  %1622 = vperm.xlu0 %2942, %v1540_v14   ;;  %v1590_v14 = vld [vmem:[#allocation2 + $0xb0] sm:$0xff] }
 0x1d5   : > { %2688 = vmatprep.subr.mxu0 %v1793_v22  ;;  %2746 = vmatprep.subr.mxu1 %v1793_v22 }
 0x1d6   : > { %2689 = vmatpush3.msra.mxu0 %v1793_v22  ;;  %2754 = vmatpush3.msra.mxu1 %v1793_v22 }
 0x1d7   : > { %2690 = vmatprep.subr.mxu0 %v1792_v23  ;;  %2747 = vmatprep.subr.mxu1 %v1792_v23 }
 0x1d8   : > { %1707 = vperm.xlu1 %2943, %v1557_v17   ;;  %1627 = vperm.xlu0 %2942, %v1541_v18  }
 0x1d9   : > { %2691 = vmatpush3.msra.mxu0 %v1792_v23  ;;  %2755 = vmatpush3.msra.mxu1 %v1792_v23 }
 0x1dc   : > { %1712 = vperm.xlu1 %2943, %v1558_v20   ;;  %1632 = vperm.xlu0 %2942, %v1542_v21   ;;  %v1591_v20 = vld [vmem:[#allocation2 + $0xb8] sm:$0xff] }
 0x1dd   : > { %v1575_v21 = vld [vmem:[#allocation2 + $0x38] sm:$0xff] }
 0x1e0   : > { %1717 = vperm.xlu1 %2943, %v1559_v24   ;;  %1637 = vperm.xlu0 %2942, %v1543_v25  }
 0x1e4   : > { %1722 = vperm.xlu1 %2943, %v1560_v26   ;;  %1642 = vperm.xlu0 %2942, %v1544_v27   ;;  %v1592_v26 = vld [vmem:[#allocation2 + $0xc0] sm:$0xff] }
 0x1e5   : > { %v1576_v27 = vld [vmem:[#allocation2 + $0x40] sm:$0xff] }
 0x1e8   : > { %1727 = vperm.xlu1 %2943, %v1561_v28   ;;  %1647 = vperm.xlu0 %2942, %v1545_v29  }
 0x1ec   : > { %1732 = vperm.xlu1 %2943, %v1562_v30   ;;  %1652 = vperm.xlu0 %2942, %v1546_v31  }
 0x1f0   : > { %1737 = vperm.xlu1 %2943, %v1563_v32   ;;  %1657 = vperm.xlu0 %2942, %v1547_v33   ;;  %v1593_v32 = vld [vmem:[#allocation2 + $0xc8] sm:$0xff] }
 0x1f1   : > { %v1577_v33 = vld [vmem:[#allocation2 + $0x48] sm:$0xff] }
 0x1f4   : > { %1742 = vperm.xlu1 %2943, %v1564_v34   ;;  %1662 = vperm.xlu0 %2942, %v1548_v35  }
 0x1f8   : > { %1747 = vperm.xlu1 %2943, %v1565_v36   ;;  %1667 = vperm.xlu0 %2942, %v1549_v37  }
 0x1fc   : > { %1752 = vperm.xlu1 %2943, %v1566_v38   ;;  %1672 = vperm.xlu0 %2942, %v1550_v39   ;;  %v1594_v38 = vld [vmem:[#allocation2 + $0xd0] sm:$0xff] }
 0x1fd   : > { %v1578_v39 = vld [vmem:[#allocation2 + $0x50] sm:$0xff] }
 0x200   : > { %1757 = vperm.xlu1 %2943, %v1567_v40   ;;  %1677 = vperm.xlu0 %2942, %v1551_v41  }
 0x23f   : > { %v1608_v44 = vpop.permute.xlu1 %1607  ;;  %v1603_v45 = vpop.permute.xlu0 %1602 }
 0x240   : > { %v1761_v46 = vmul.f32 %v1608_v44, %v1569_v42  ;;  %v1760_v47 = vmul.f32 %v1603_v45, %v1568_v43  ;;  %v1595_v44 = vld [vmem:[#allocation2 + $0xd8] sm:$0xff] }
 0x241   : > { %v1579_v45 = vld [vmem:[#allocation2 + $0x58] sm:$0xff] }
 0x242   : > { %2692 = vmatprep.mubr.msk.f32.mxu0 %vm1499_vm1, %v1760_v47 }
 0x243   : > { %v1688_v50 = vpop.permute.xlu1 %1687  ;;  %2693 = vmatmul.mubr.msk.f32.vlgmr.msra.gmra.mxu0 %vm1499_vm1, %v1761_v46  ;;  %v1683_v51 = vpop.permute.xlu0 %1682 }
 0x244   : > { %v1777_v52 = vmul.f32 %v1688_v50, %v1585_v48  ;;  %v1776_v53 = vmul.f32 %v1683_v51, %v1584_v49  ;;  %v1596_v50 = vld [vmem:[#allocation2 + $0xe0] sm:$0xff] }
 0x245   : > { %v1580_v51 = vld [vmem:[#allocation2 + $0x60] sm:$0xff] }
 0x246   : > { %2716 = vmatprep.mubr.msk.f32.mxu1 %vm1499_vm1, %v1776_v53 }
 0x247   : > { %v1693_v56 = vpop.permute.xlu1 %1692  ;;  %2717 = vmatmul.mubr.msk.f32.vlgmr.msra.gmra.mxu1 %vm1499_vm1, %v1777_v52  ;;  %v1613_v57 = vpop.permute.xlu0 %1612 }
 0x248   : > { %v1778_v58 = vmul.f32 %v1693_v56, %v1586_v54  ;;  %v1762_v59 = vmul.f32 %v1613_v57, %v1570_v55  ;;  %v1597_v56 = vld [vmem:[#allocation2 + $0xe8] sm:$0xff] }
 0x249   : > { %v1581_v57 = vld [vmem:[#allocation2 + $0x68] sm:$0xff] }
 0x24a   : > { %2695 = vmatprep.mubr.msk.f32.mxu0 %vm1499_vm1, %v1762_v59  ;;  %2719 = vmatprep.mubr.msk.f32.mxu1 %vm1499_vm1, %v1778_v58 }
 0x24b   : > { %v1698_v62 = vpop.permute.xlu1 %1697  ;;  %v1618_v63 = vpop.permute.xlu0 %1617 }
 0x24c   : > { %v1779_v0 = vmul.f32 %v1698_v62, %v1587_v60  ;;  %v1763_v1 = vmul.f32 %v1618_v63, %v1571_v61  ;;  %v1598_v62 = vld [vmem:[#allocation2 + $0xf0] sm:$0xff] }
 0x24d   : > { %v1582_v63 = vld [vmem:[#allocation2 + $0x70] sm:$0xff] }
 0x24e   : > { %2696 = vmatmul.mubr.msk.f32.gmra.mxu0 %vm1499_vm1, %v1763_v1  ;;  %2720 = vmatmul.mubr.msk.f32.gmra.mxu1 %vm1499_vm1, %v1779_v0 }
 0x24f   : > { %v1703_v4 = vpop.permute.xlu1 %1702  ;;  %v1623_v5 = vpop.permute.xlu0 %1622 }
 0x250   : > { %v1780_v6 = vmul.f32 %v1703_v4, %v1588_v2  ;;  %v1764_v7 = vmul.f32 %v1623_v5, %v1572_v3  ;;  %v1599_v4 = vld [vmem:[#allocation2 + $0xf8] sm:$0xff] }
 0x251   : > { %v1583_v5 = vld [vmem:[#allocation2 + $0x78] sm:$0xff] }
 0x252   : > { %2698 = vmatprep.mubr.msk.f32.mxu0 %vm1499_vm1, %v1764_v7  ;;  %2722 = vmatprep.mubr.msk.f32.mxu1 %vm1499_vm1, %v1780_v6 }
 0x253   : > { %v1708_v10 = vpop.permute.xlu1 %1707  ;;  %v1628_v11 = vpop.permute.xlu0 %1627 }
 0x254   : > { %v1781_v12 = vmul.f32 %v1708_v10, %v1589_v8  ;;  %v1765_v13 = vmul.f32 %v1628_v11, %v1573_v9  ;;  %v3499_v10 = vld [vmem:[%s3590_s4] ss:$0 sm:$0xff] }
 0x256   : > { %2699 = vmatmul.mubr.msk.f32.gmra.mxu0 %vm1499_vm1, %v1765_v13  ;;  %2723 = vmatmul.mubr.msk.f32.gmra.mxu1 %vm1499_vm1, %v1781_v12 }
 0x257   : > { %v1713_v16 = vpop.permute.xlu1 %1712  ;;  %v1633_v17 = vpop.permute.xlu0 %1632 }
 0x258   : > { %v1782_v18 = vmul.f32 %v1713_v16, %v1590_v14  ;;  %v1766_v19 = vmul.f32 %v1633_v17, %v1574_v15 }
 0x25a   : > { %2701 = vmatprep.mubr.msk.f32.mxu0 %vm1499_vm1, %v1766_v19  ;;  %2725 = vmatprep.mubr.msk.f32.mxu1 %vm1499_vm1, %v1782_v18 }
 0x25b   : > { %v1718_v22 = vpop.permute.xlu1 %1717  ;;  %v1638_v23 = vpop.permute.xlu0 %1637 }
 0x25c   : > { %v1783_v24 = vmul.f32 %v1718_v22, %v1591_v20  ;;  %v1767_v25 = vmul.f32 %v1638_v23, %v1575_v21 }
 0x25e   : > { %2702 = vmatmul.mubr.msk.f32.gmra.mxu0 %vm1499_vm1, %v1767_v25  ;;  %2726 = vmatmul.mubr.msk.f32.gmra.mxu1 %vm1499_vm1, %v1783_v24 }
 0x25f   : > { %v1723_v28 = vpop.permute.xlu1 %1722  ;;  %v1643_v29 = vpop.permute.xlu0 %1642 }
 0x260   : > { %v1784_v30 = vmul.f32 %v1723_v28, %v1592_v26  ;;  %v1768_v31 = vmul.f32 %v1643_v29, %v1576_v27 }
 0x262   : > { %2704 = vmatprep.mubr.msk.f32.mxu0 %vm1499_vm1, %v1768_v31  ;;  %2728 = vmatprep.mubr.msk.f32.mxu1 %vm1499_vm1, %v1784_v30 }
 0x263   : > { %v1728_v34 = vpop.permute.xlu1 %1727  ;;  %v1648_v35 = vpop.permute.xlu0 %1647 }
 0x264   : > { %v1785_v36 = vmul.f32 %v1728_v34, %v1593_v32  ;;  %v1769_v37 = vmul.f32 %v1648_v35, %v1577_v33 }
 0x266   : > { %2705 = vmatmul.mubr.msk.f32.gmra.mxu0 %vm1499_vm1, %v1769_v37  ;;  %2729 = vmatmul.mubr.msk.f32.gmra.mxu1 %vm1499_vm1, %v1785_v36 }
 0x267   : > { %v1733_v40 = vpop.permute.xlu1 %1732  ;;  %v1653_v41 = vpop.permute.xlu0 %1652 }
 0x268   : > { %v1786_v42 = vmul.f32 %v1733_v40, %v1594_v38  ;;  %v1770_v43 = vmul.f32 %v1653_v41, %v1578_v39 }
 0x26a   : > { %2707 = vmatprep.mubr.msk.f32.mxu0 %vm1499_vm1, %v1770_v43  ;;  %2731 = vmatprep.mubr.msk.f32.mxu1 %vm1499_vm1, %v1786_v42 }
 0x26b   : > { %v1738_v46 = vpop.permute.xlu1 %1737  ;;  %v1658_v47 = vpop.permute.xlu0 %1657 }
 0x26c   : > { %v1787_v48 = vmul.f32 %v1738_v46, %v1595_v44  ;;  %v1771_v49 = vmul.f32 %v1658_v47, %v1579_v45 }
 0x26e   : > { %2708 = vmatmul.mubr.msk.f32.gmra.mxu0 %vm1499_vm1, %v1771_v49  ;;  %2732 = vmatmul.mubr.msk.f32.gmra.mxu1 %vm1499_vm1, %v1787_v48 }
 0x26f   : > { %v1743_v52 = vpop.permute.xlu1 %1742  ;;  %v1663_v53 = vpop.permute.xlu0 %1662 }
 0x270   : > { %v1788_v54 = vmul.f32 %v1743_v52, %v1596_v50  ;;  %v1772_v55 = vmul.f32 %v1663_v53, %v1580_v51 }
 0x272   : > { %2710 = vmatprep.mubr.msk.f32.mxu0 %vm1499_vm1, %v1772_v55  ;;  %2734 = vmatprep.mubr.msk.f32.mxu1 %vm1499_vm1, %v1788_v54 }
 0x273   : > { %v1748_v58 = vpop.permute.xlu1 %1747  ;;  %v1668_v59 = vpop.permute.xlu0 %1667 }
 0x274   : > { %v1789_v60 = vmul.f32 %v1748_v58, %v1597_v56  ;;  %v1773_v61 = vmul.f32 %v1668_v59, %v1581_v57 }
 0x276   : > { %2711 = vmatmul.mubr.msk.f32.gmra.mxu0 %vm1499_vm1, %v1773_v61  ;;  %2735 = vmatmul.mubr.msk.f32.gmra.mxu1 %vm1499_vm1, %v1789_v60 }
 0x277   : > { %v1753_v0 = vpop.permute.xlu1 %1752  ;;  %v1673_v1 = vpop.permute.xlu0 %1672 }
 0x278   : > { %v1790_v2 = vmul.f32 %v1753_v0, %v1598_v62  ;;  %v1774_v3 = vmul.f32 %v1673_v1, %v1582_v63 }
 0x27a   : > { %2713 = vmatprep.mubr.msk.f32.mxu0 %vm1499_vm1, %v1774_v3  ;;  %2737 = vmatprep.mubr.msk.f32.mxu1 %vm1499_vm1, %v1790_v2 }
 0x27b   : > { %v1758_v6 = vpop.permute.xlu1 %1757  ;;  %v1678_v7 = vpop.permute.xlu0 %1677 }
 0x27c   : > { %v1791_v8 = vmul.f32 %v1758_v6, %v1599_v4  ;;  %v1775_v9 = vmul.f32 %v1678_v7, %v1583_v5 }
 0x27e   : > { %2714 = vmatmul.mubr.msk.f32.gmra.mxu0 %vm1499_vm1, %v1775_v9  ;;  %2738 = vmatmul.mubr.msk.f32.gmra.mxu1 %vm1499_vm1, %v1791_v8 }
 0x303   : > { %v2694_v11 = vpop.f32.mrf.mxu0 }
 0x304   : > { %v1975_v12 = vadd.f32 %v2694_v11, %v3499_v10 }
 0x305   : > { %v1969_v13 = vpop.f32.mrf.mxu0 }
 0x306   : > { %2129 = vst [vmem:[%s3242_s15 + $0x8] sm:$0xff] %v1975_v12  ;;  %v1970_v14 = vadd.f32 %v3499_v10, %v1969_v13 }
 0x307   : > { %v2718_v15 = vpop.f32.mrf.mxu1 }
 0x308   : > { %2128 = vst [vmem:[%s3242_s15] sm:$0xff] %v1970_v14  ;;  %v2055_v16 = vadd.f32 %v2718_v15, %v3499_v10 }
 0x309   : > { %v2049_v17 = vpop.f32.mrf.mxu1 }
 0x30a   : > { %2145 = vst [vmem:[%s3242_s15 + $0x88] sm:$0xff] %v2055_v16  ;;  %v2050_v18 = vadd.f32 %v3499_v10, %v2049_v17 }
 0x30c   : > { %2144 = vst [vmem:[%s3242_s15 + $0x80] sm:$0xff] %v2050_v18 }
 0x30e   : > { %v2697_v19 = vpop.f32.mrf.mxu0  ;;  %v2721_v20 = vpop.f32.mrf.mxu1 }
 0x30f   : > { %v1985_v21 = vadd.f32 %v2697_v19, %v3499_v10  ;;  %v2065_v22 = vadd.f32 %v2721_v20, %v3499_v10 }
 0x310   : > { %v1979_v23 = vpop.f32.mrf.mxu0  ;;  %v2059_v24 = vpop.f32.mrf.mxu1 }
 0x311   : > { %2131 = vst [vmem:[%s3242_s15 + $0x18] sm:$0xff] %v1985_v21  ;;  %2147 = vst [vmem:[%s3242_s15 + $0x98] sm:$0xff] %v2065_v22  ;;  %v1980_v25 = vadd.f32 %v3499_v10, %v1979_v23  ;;  %v2060_v26 = vadd.f32 %v3499_v10, %v2059_v24 }
 0x313   : > { %2130 = vst [vmem:[%s3242_s15 + $0x10] sm:$0xff] %v1980_v25  ;;  %2146 = vst [vmem:[%s3242_s15 + $0x90] sm:$0xff] %v2060_v26 }
 0x316   : > { %v2700_v27 = vpop.f32.mrf.mxu0  ;;  %v2724_v28 = vpop.f32.mrf.mxu1 }
 0x317   : > { %v1995_v29 = vadd.f32 %v2700_v27, %v3499_v10  ;;  %v2075_v30 = vadd.f32 %v2724_v28, %v3499_v10 }
 0x318   : > { %v1989_v31 = vpop.f32.mrf.mxu0  ;;  %v2069_v32 = vpop.f32.mrf.mxu1 }
 0x319   : > { %2133 = vst [vmem:[%s3242_s15 + $0x28] sm:$0xff] %v1995_v29  ;;  %2149 = vst [vmem:[%s3242_s15 + $0xa8] sm:$0xff] %v2075_v30  ;;  %v1990_v33 = vadd.f32 %v3499_v10, %v1989_v31  ;;  %v2070_v34 = vadd.f32 %v3499_v10, %v2069_v32 }
 0x31b   : > { %2132 = vst [vmem:[%s3242_s15 + $0x20] sm:$0xff] %v1990_v33  ;;  %2148 = vst [vmem:[%s3242_s15 + $0xa0] sm:$0xff] %v2070_v34 }
 0x31e   : > { %v2703_v35 = vpop.f32.mrf.mxu0  ;;  %v2727_v36 = vpop.f32.mrf.mxu1 }
 0x31f   : > { %v2005_v37 = vadd.f32 %v2703_v35, %v3499_v10  ;;  %v2085_v38 = vadd.f32 %v2727_v36, %v3499_v10 }
 0x320   : > { %v1999_v39 = vpop.f32.mrf.mxu0  ;;  %v2079_v40 = vpop.f32.mrf.mxu1 }
 0x321   : > { %2135 = vst [vmem:[%s3242_s15 + $0x38] sm:$0xff] %v2005_v37  ;;  %2151 = vst [vmem:[%s3242_s15 + $0xb8] sm:$0xff] %v2085_v38  ;;  %v2000_v41 = vadd.f32 %v3499_v10, %v1999_v39  ;;  %v2080_v42 = vadd.f32 %v3499_v10, %v2079_v40 }
 0x323   : > { %2134 = vst [vmem:[%s3242_s15 + $0x30] sm:$0xff] %v2000_v41  ;;  %2150 = vst [vmem:[%s3242_s15 + $0xb0] sm:$0xff] %v2080_v42 }
 0x326   : > { %v2706_v43 = vpop.f32.mrf.mxu0  ;;  %v2730_v44 = vpop.f32.mrf.mxu1 }
 0x327   : > { %v2015_v45 = vadd.f32 %v2706_v43, %v3499_v10  ;;  %v2095_v46 = vadd.f32 %v2730_v44, %v3499_v10 }
 0x328   : > { %v2009_v47 = vpop.f32.mrf.mxu0  ;;  %v2089_v48 = vpop.f32.mrf.mxu1 }
 0x329   : > { %2137 = vst [vmem:[%s3242_s15 + $0x48] sm:$0xff] %v2015_v45  ;;  %2153 = vst [vmem:[%s3242_s15 + $0xc8] sm:$0xff] %v2095_v46  ;;  %v2010_v49 = vadd.f32 %v3499_v10, %v2009_v47  ;;  %v2090_v50 = vadd.f32 %v3499_v10, %v2089_v48 }
 0x32b   : > { %2136 = vst [vmem:[%s3242_s15 + $0x40] sm:$0xff] %v2010_v49  ;;  %2152 = vst [vmem:[%s3242_s15 + $0xc0] sm:$0xff] %v2090_v50 }
 0x32e   : > { %v2709_v51 = vpop.f32.mrf.mxu0  ;;  %v2733_v52 = vpop.f32.mrf.mxu1 }
 0x32f   : > { %v2025_v53 = vadd.f32 %v2709_v51, %v3499_v10  ;;  %v2105_v54 = vadd.f32 %v2733_v52, %v3499_v10 }
 0x330   : > { %v2019_v55 = vpop.f32.mrf.mxu0  ;;  %v2099_v56 = vpop.f32.mrf.mxu1 }
 0x331   : > { %2139 = vst [vmem:[%s3242_s15 + $0x58] sm:$0xff] %v2025_v53  ;;  %2155 = vst [vmem:[%s3242_s15 + $0xd8] sm:$0xff] %v2105_v54  ;;  %v2020_v57 = vadd.f32 %v3499_v10, %v2019_v55  ;;  %v2100_v58 = vadd.f32 %v3499_v10, %v2099_v56 }
 0x333   : > { %2138 = vst [vmem:[%s3242_s15 + $0x50] sm:$0xff] %v2020_v57  ;;  %2154 = vst [vmem:[%s3242_s15 + $0xd0] sm:$0xff] %v2100_v58 }
 0x336   : > { %v2712_v59 = vpop.f32.mrf.mxu0  ;;  %v2736_v60 = vpop.f32.mrf.mxu1 }
 0x337   : > { %v2035_v61 = vadd.f32 %v2712_v59, %v3499_v10  ;;  %v2115_v62 = vadd.f32 %v2736_v60, %v3499_v10 }
 0x338   : > { %v2029_v63 = vpop.f32.mrf.mxu0  ;;  %v2109_v0 = vpop.f32.mrf.mxu1 }
 0x339   : > { %2141 = vst [vmem:[%s3242_s15 + $0x68] sm:$0xff] %v2035_v61  ;;  %2157 = vst [vmem:[%s3242_s15 + $0xe8] sm:$0xff] %v2115_v62  ;;  %v2030_v1 = vadd.f32 %v3499_v10, %v2029_v63  ;;  %v2110_v2 = vadd.f32 %v3499_v10, %v2109_v0 }
 0x33b   : > { %2140 = vst [vmem:[%s3242_s15 + $0x60] sm:$0xff] %v2030_v1  ;;  %2156 = vst [vmem:[%s3242_s15 + $0xe0] sm:$0xff] %v2110_v2 }
 0x33e   : > { %v2715_v3 = vpop.f32.mrf.mxu0  ;;  %v2739_v4 = vpop.f32.mrf.mxu1 }
 0x33f   : > { %v2045_v5 = vadd.f32 %v2715_v3, %v3499_v10  ;;  %v2125_v6 = vadd.f32 %v2739_v4, %v3499_v10 }
 0x340   : > { %v2039_v7 = vpop.f32.mrf.mxu0  ;;  %v2119_v8 = vpop.f32.mrf.mxu1 }
 0x341   : > { %2143 = vst [vmem:[%s3242_s15 + $0x78] sm:$0xff] %v2045_v5  ;;  %2159 = vst [vmem:[%s3242_s15 + $0xf8] sm:$0xff] %v2125_v6  ;;  %v2040_v9 = vadd.f32 %v3499_v10, %v2039_v7  ;;  %v2120_v11 = vadd.f32 %v3499_v10, %v2119_v8 }
 0x343   : > { %2142 = vst [vmem:[%s3242_s15 + $0x70] sm:$0xff] %v2040_v9  ;;  %2158 = vst [vmem:[%s3242_s15 + $0xf0] sm:$0xff] %v2120_v11 }
 0x344 PF: > { %s15_s24 = sadd.s32 1, %s2998_s24   ;;  %s3592_s18 = smov %s2978_s19 }
 0x345   : > { %p12_p0 = scmp.ge.s32.totalorder %s15_s24, 10   ;;  %s3593_s19 = smov %s3083_s6 }
 0x346   : > { %s3594_s20 = smov %s2990_s22  ;;  %s3595_s21 = smov %s2994_s23 }
 0x347   : > { %s3596_s22 = smov %s3599_s25  ;;  %s3597_s23 = smov %s3603_s26 }
 0x348   :  { %14 = sbr.rel (!%p12_p0) target bundleno = 4 (0x4), region = 112 }

</bundles_post_ra>
